<compile_context>
chip_gen: v5e
topology: v5e:2x2
jax: 0.10.0
libtpu: 0.0.40
codegen_flags: <defaults>
</compile_context>

<pallas_src>
import functools

import jax
import jax.numpy as jnp
import numpy as np
from jax.experimental import pallas as pl
from jax.experimental.pallas import tpu as pltpu


def _round_up(x, m):
    return ((x + m - 1) // m) * m


def fire_kernel(xm_ref, xh1_ref, xh2_ref, wsq_ref, wexp_ref, bexp_ref,
                o_ref, stage_ref, *, width, wp2, tile_h):
    # xm_ref   : (TH*Wp2, Cin+1)   main slab: padded rows [t*TH, t*TH+TH)
    # xh1_ref  : (Wp2, Cin+1)      halo row (t+1)*TH
    # xh2_ref  : (Wp2, Cin+1)      halo row (t+1)*TH + 1
    # wsq_ref  : (Cin+1, Csq)      squeeze weight, bias folded into last row
    # wexp_ref : (9*Csq, Ce1+Ce3)  combined expand weights (1x1 in centre tap)
    # bexp_ref : (1, Ce1+Ce3)
    # o_ref    : (TH, W, Ce1+Ce3)  dense output tile
    # stage_ref: ((TH+2)*Wp2, Csq) VMEM staging of the zero-padded squeeze map
    W, Wp2, TH = width, wp2, tile_h
    LA = TH * Wp2                       # rows staged from the main slab
    L = (TH - 1) * Wp2 + W              # matmul band length (covers all pixels)
    base = Wp2 + 1                      # slab-flat index of output pixel (0, 0)

    # ---- squeeze: 1x1 conv + ReLU.  Bias comes from the indicator channel,
    # so spatially zero-padded positions stay exactly zero after ReLU. -------
    wsq = wsq_ref[...]

    def squeeze(x):
        return jnp.maximum(
            jnp.dot(x, wsq, preferred_element_type=jnp.float32), 0.0)

    stage_ref[0:LA, :] = squeeze(xm_ref[...]).astype(stage_ref.dtype)
    stage_ref[LA:LA + Wp2, :] = squeeze(xh1_ref[...]).astype(stage_ref.dtype)
    stage_ref[LA + Wp2:LA + 2 * Wp2, :] = (
        squeeze(xh2_ref[...]).astype(stage_ref.dtype))

    # ---- implicit im2col: 9 shifted views of the staged squeeze map,
    # concatenated along lanes -> ONE K = 9*Csq MXU matmul. ------------------
    shifts = [dy * Wp2 + dx for dy in (-1, 0, 1) for dx in (-1, 0, 1)]
    taps = [stage_ref[base + s:base + s + L, :] for s in shifts]
    col = jnp.concatenate(taps, axis=-1)                      # (L, 9*Csq)

    y = jnp.dot(col, wexp_ref[...], preferred_element_type=jnp.float32)
    y = jnp.maximum(y + bexp_ref[...], 0.0)                   # bias in epilogue

    # ---- compact the Wp2-strided band rows into the dense output tile ------
    for h in range(TH):
        o_ref[h, :, :] = y[h * Wp2:h * Wp2 + W, :].astype(o_ref.dtype)


def fire_forward_nhwc(x_nhwc, params, *, tile_h=None):
    """Fire forward, channels-last: (B, H, W, Cin) -> (B, H, W, Ce1+Ce3)."""
    B, H, W, Cin = x_nhwc.shape
    dtype = x_nhwc.dtype
    wsq, bsq = params["wsq"], params["bsq"]      # (Csq, Cin), (Csq,)
    we1, be1 = params["we1"], params["be1"]      # (Ce1, Csq), (Ce1,)
    we3, be3 = params["we3"], params["be3"]      # (Ce3, Csq, 3, 3), (Ce3,)
    Csq, Ce1, Ce3 = wsq.shape[0], we1.shape[0], we3.shape[0]
    Ce = Ce1 + Ce3

    if tile_h is None:
        tile_h = 8 if H % 8 == 0 else H   # TODO(synk): row tiling for H % 8 != 0
    assert H % tile_h == 0
    n_tiles = H // tile_h
    Wp2 = max(_round_up(W + 2, 8), 8)     # padded row width (multiple of 8)
    Cin1 = Cin + 1

    # Input: add an indicator channel (1 inside the image), zero-pad spatially
    # to (H+2, Wp2) and flatten rows.  Padded positions are all-zero, so the
    # folded squeeze bias never leaks into the 3x3 zero-padding.
    ind = jnp.ones((B, H, W, 1), dtype)
    xa = jnp.concatenate([x_nhwc, ind], axis=-1)
    xp = jnp.pad(xa, ((0, 0), (1, 1), (1, Wp2 - W - 1), (0, 0)))
    x_flat = xp.reshape(B, (H + 2) * Wp2, Cin1)

    # Squeeze weight with bias folded into the indicator row.
    wsq_aug = jnp.concatenate(
        [jnp.transpose(wsq, (1, 0)), bsq.reshape(1, Csq)], axis=0).astype(dtype)

    # Combined expand weights (9*Csq, Ce1+Ce3); expand1x1 in the centre tap.
    w3 = jnp.transpose(we3, (2, 3, 1, 0)).reshape(9 * Csq, Ce3)
    wexp = jnp.zeros((9 * Csq, Ce), jnp.float32)
    wexp = wexp.at[:, Ce1:].set(w3)
    wexp = wexp.at[4 * Csq:5 * Csq, :Ce1].set(jnp.transpose(we1, (1, 0)))
    wexp = wexp.astype(dtype)
    bexp = jnp.concatenate([be1, be3]).reshape(1, Ce).astype(jnp.float32)

    kernel = functools.partial(fire_kernel, width=W, wp2=Wp2, tile_h=tile_h)
    out = pl.pallas_call(
        kernel,
        out_shape=jax.ShapeDtypeStruct((B, H, W, Ce), dtype),
        grid=(B, n_tiles),
        in_specs=[
            # main slab: TH padded rows starting at padded row t*TH
            pl.BlockSpec((None, tile_h * Wp2, Cin1), lambda b, t: (b, t, 0)),
            # bottom halo rows (one padded row each; block size = one row)
            pl.BlockSpec((None, Wp2, Cin1),
                         lambda b, t: (b, (t + 1) * tile_h, 0)),
            pl.BlockSpec((None, Wp2, Cin1),
                         lambda b, t: (b, (t + 1) * tile_h + 1, 0)),
            pl.BlockSpec((Cin1, Csq), lambda b, t: (0, 0)),
            pl.BlockSpec((9 * Csq, Ce), lambda b, t: (0, 0)),
            pl.BlockSpec((1, Ce), lambda b, t: (0, 0)),
        ],
        out_specs=pl.BlockSpec((None, tile_h, W, Ce), lambda b, t: (b, t, 0, 0)),
        scratch_shapes=[pltpu.VMEM(((tile_h + 2) * Wp2, Csq), dtype)],
        compiler_params=pltpu.CompilerParams(
            dimension_semantics=("parallel", "parallel"),
            vmem_limit_bytes=64 * 1024 * 1024),
    )(x_flat, x_flat, x_flat, wsq_aug, wexp, bexp)
    return out


def fire_forward(x_nchw, params):
    """PyTorch-convention Fire forward: (B, Cin, H, W) -> (B, Ce1+Ce3, H, W)."""
    x_nhwc = jnp.transpose(x_nchw, (0, 2, 3, 1))
    out_nhwc = fire_forward_nhwc(x_nhwc, params)
    return jnp.transpose(out_nhwc, (0, 3, 1, 2))


def fire_reference(x_nchw, params):
    """Pure-JAX reference (lax conv, NCHW/OIHW like PyTorch) for correctness."""
    dn = ("NCHW", "OIHW", "NCHW")

    def conv(inp, w, b, pad):
        y = jax.lax.conv_general_dilated(inp, w, (1, 1), pad,
                                         dimension_numbers=dn,
                                         precision=jax.lax.Precision.HIGHEST)
        return jnp.maximum(y + b.reshape(1, -1, 1, 1), 0.0)

    sq = conv(x_nchw, params["wsq"][:, :, None, None], params["bsq"], "VALID")
    e1 = conv(sq, params["we1"][:, :, None, None], params["be1"], "VALID")
    e3 = conv(sq, params["we3"], params["be3"], [(1, 1), (1, 1)])
    return jnp.concatenate([e1, e3], axis=1)


if __name__ == "__main__":
    # Fire(inplanes=4, squeeze_planes=8, expand1x1_planes=16, expand3x3_planes=16)
    B, Cin, H, W = 2, 4, 16, 16
    Csq, Ce1, Ce3 = 8, 16, 16

    key = jax.random.PRNGKey(0)
    ks = jax.random.split(key, 7)
    x = jax.random.normal(ks[0], (B, Cin, H, W), jnp.float32)
    params = dict(
        wsq=jax.random.normal(ks[1], (Csq, Cin), jnp.float32) * 0.2,
        bsq=jax.random.normal(ks[2], (Csq,), jnp.float32) * 0.1,
        we1=jax.random.normal(ks[3], (Ce1, Csq), jnp.float32) * 0.2,
        be1=jax.random.normal(ks[4], (Ce1,), jnp.float32) * 0.1,
        we3=jax.random.normal(ks[5], (Ce3, Csq, 3, 3), jnp.float32) * 0.2,
        be3=jax.random.normal(ks[6], (Ce3,), jnp.float32) * 0.1,
    )

    out = fire_forward(x, params)
    jax.block_until_ready(out)

    assert out.shape == (B, Ce1 + Ce3, H, W), out.shape
    ref = fire_reference(x, params)
    np.testing.assert_allclose(np.asarray(out), np.asarray(ref),
                               rtol=1e-3, atol=1e-3)
    print("KERNEL_OK")
</pallas_src>

<mosaic_0001>
module attributes {stable_mosaic.version = 11 : i64} {
  func.func @fire_kernel(%arg0: i32, %arg1: i32, %arg2: memref<1x192x5xf32, #tpu.memory_space<vmem>>, %arg3: memref<1x24x5xf32, #tpu.memory_space<vmem>>, %arg4: memref<1x24x5xf32, #tpu.memory_space<vmem>>, %arg5: memref<5x8xf32, #tpu.memory_space<vmem>>, %arg6: memref<72x32xf32, #tpu.memory_space<vmem>>, %arg7: memref<1x32xf32, #tpu.memory_space<vmem>>, %arg8: memref<1x8x16x32xf32, #tpu.memory_space<vmem>>, %arg9: memref<240x8xf32, #tpu.memory_space<vmem>>) attributes {dimension_semantics = [#tpu.dimension_semantics<parallel>, #tpu.dimension_semantics<parallel>], iteration_bounds = array<i64: 2, 2>, scalar_prefetch = 0 : i64, scratch_operands = 1 : i64, tpu.core_type = #tpu.core_type<tc>, window_params = [{transform_indices = @transform_0, window_bounds = array<i64: 1, 192, 5>}, {transform_indices = @transform_1, window_bounds = array<i64: 1, 24, 5>}, {transform_indices = @transform_2, window_bounds = array<i64: 1, 24, 5>}, {pipeline_mode = #tpu.pipeline_mode<synchronous>, transform_indices = @transform_3, window_bounds = array<i64: 5, 8>}, {pipeline_mode = #tpu.pipeline_mode<synchronous>, transform_indices = @transform_4, window_bounds = array<i64: 72, 32>}, {pipeline_mode = #tpu.pipeline_mode<synchronous>, transform_indices = @transform_5, window_bounds = array<i64: 1, 32>}, {transform_indices = @transform_6, window_bounds = array<i64: 1, 8, 16, 32>}]} {
    %c0 = arith.constant 0 : index
    %c0_0 = arith.constant 0 : index
    %0 = vector.load %arg5[%c0, %c0_0] : memref<5x8xf32, #tpu.memory_space<vmem>>, vector<5x8xf32>
    %c0_1 = arith.constant 0 : index
    %c0_2 = arith.constant 0 : index
    %c0_3 = arith.constant 0 : index
    %1 = vector.load %arg2[%c0_1, %c0_2, %c0_3] : memref<1x192x5xf32, #tpu.memory_space<vmem>>, vector<1x192x5xf32>
    %2 = vector.shape_cast %1 : vector<1x192x5xf32> to vector<192x5xf32>
    %cst = arith.constant dense<0.000000e+00> : vector<192x8xf32>
    %3 = tpu.matmul %2, %0, %cst {dimension_numbers = #tpu.dot_dimension_numbers<[1], [0], [0], [1], [0, 0, 1, 1], [], []>} : vector<192x5xf32>, vector<5x8xf32>, vector<192x8xf32> -> vector<192x8xf32>
    %cst_4 = arith.constant 0.000000e+00 : f32
    %4 = vector.broadcast %cst_4 : f32 to vector<192x8xf32>
    %5 = arith.maximumf %3, %4 : vector<192x8xf32>
    %c0_5 = arith.constant 0 : index
    %c0_6 = arith.constant 0 : index
    %6 = vector.load %arg9[%c0_5, %c0_6] : memref<240x8xf32, #tpu.memory_space<vmem>>, vector<192x8xf32>
    tpu.vector_store %arg9[%c0_5, %c0_6], %5 {strides = array<i32>} : memref<240x8xf32, #tpu.memory_space<vmem>>, vector<192x8xf32>,
    %c0_7 = arith.constant 0 : index
    %c0_8 = arith.constant 0 : index
    %c0_9 = arith.constant 0 : index
    %7 = vector.load %arg3[%c0_7, %c0_8, %c0_9] : memref<1x24x5xf32, #tpu.memory_space<vmem>>, vector<1x24x5xf32>
    %8 = vector.shape_cast %7 : vector<1x24x5xf32> to vector<24x5xf32>
    %cst_10 = arith.constant dense<0.000000e+00> : vector<24x8xf32>
    %9 = tpu.matmul %8, %0, %cst_10 {dimension_numbers = #tpu.dot_dimension_numbers<[1], [0], [0], [1], [0, 0, 1, 1], [], []>} : vector<24x5xf32>, vector<5x8xf32>, vector<24x8xf32> -> vector<24x8xf32>
    %cst_11 = arith.constant 0.000000e+00 : f32
    %10 = vector.broadcast %cst_11 : f32 to vector<24x8xf32>
    %11 = arith.maximumf %9, %10 : vector<24x8xf32>
    %c192 = arith.constant 192 : index
    %c0_12 = arith.constant 0 : index
    %12 = vector.load %arg9[%c192, %c0_12] : memref<240x8xf32, #tpu.memory_space<vmem>>, vector<24x8xf32>
    tpu.vector_store %arg9[%c192, %c0_12], %11 {strides = array<i32>} : memref<240x8xf32, #tpu.memory_space<vmem>>, vector<24x8xf32>,
    %c0_13 = arith.constant 0 : index
    %c0_14 = arith.constant 0 : index
    %c0_15 = arith.constant 0 : index
    %13 = vector.load %arg4[%c0_13, %c0_14, %c0_15] : memref<1x24x5xf32, #tpu.memory_space<vmem>>, vector<1x24x5xf32>
    %14 = vector.shape_cast %13 : vector<1x24x5xf32> to vector<24x5xf32>
    %cst_16 = arith.constant dense<0.000000e+00> : vector<24x8xf32>
    %15 = tpu.matmul %14, %0, %cst_16 {dimension_numbers = #tpu.dot_dimension_numbers<[1], [0], [0], [1], [0, 0, 1, 1], [], []>} : vector<24x5xf32>, vector<5x8xf32>, vector<24x8xf32> -> vector<24x8xf32>
    %cst_17 = arith.constant 0.000000e+00 : f32
    %16 = vector.broadcast %cst_17 : f32 to vector<24x8xf32>
    %17 = arith.maximumf %15, %16 : vector<24x8xf32>
    %c216 = arith.constant 216 : index
    %c0_18 = arith.constant 0 : index
    %18 = vector.load %arg9[%c216, %c0_18] : memref<240x8xf32, #tpu.memory_space<vmem>>, vector<24x8xf32>
    tpu.vector_store %arg9[%c216, %c0_18], %17 {strides = array<i32>} : memref<240x8xf32, #tpu.memory_space<vmem>>, vector<24x8xf32>,
    %c0_19 = arith.constant 0 : index
    %c0_20 = arith.constant 0 : index
    %19 = vector.load %arg9[%c0_19, %c0_20] : memref<240x8xf32, #tpu.memory_space<vmem>>, vector<184x8xf32>
    %c1 = arith.constant 1 : index
    %c0_21 = arith.constant 0 : index
    %20 = vector.load %arg9[%c1, %c0_21] : memref<240x8xf32, #tpu.memory_space<vmem>>, vector<184x8xf32>
    %c2 = arith.constant 2 : index
    %c0_22 = arith.constant 0 : index
    %21 = vector.load %arg9[%c2, %c0_22] : memref<240x8xf32, #tpu.memory_space<vmem>>, vector<184x8xf32>
    %c24 = arith.constant 24 : index
    %c0_23 = arith.constant 0 : index
    %22 = vector.load %arg9[%c24, %c0_23] : memref<240x8xf32, #tpu.memory_space<vmem>>, vector<184x8xf32>
    %c25 = arith.constant 25 : index
    %c0_24 = arith.constant 0 : index
    %23 = vector.load %arg9[%c25, %c0_24] : memref<240x8xf32, #tpu.memory_space<vmem>>, vector<184x8xf32>
    %c26 = arith.constant 26 : index
    %c0_25 = arith.constant 0 : index
    %24 = vector.load %arg9[%c26, %c0_25] : memref<240x8xf32, #tpu.memory_space<vmem>>, vector<184x8xf32>
    %c48 = arith.constant 48 : index
    %c0_26 = arith.constant 0 : index
    %25 = vector.load %arg9[%c48, %c0_26] : memref<240x8xf32, #tpu.memory_space<vmem>>, vector<184x8xf32>
    %c49 = arith.constant 49 : index
    %c0_27 = arith.constant 0 : index
    %26 = vector.load %arg9[%c49, %c0_27] : memref<240x8xf32, #tpu.memory_space<vmem>>, vector<184x8xf32>
    %c50 = arith.constant 50 : index
    %c0_28 = arith.constant 0 : index
    %27 = vector.load %arg9[%c50, %c0_28] : memref<240x8xf32, #tpu.memory_space<vmem>>, vector<184x8xf32>
    %28 = tpu.concatenate %19, %20, %21, %22, %23, %24, %25, %26, %27 in 1 : vector<184x8xf32>, vector<184x8xf32>, vector<184x8xf32>, vector<184x8xf32>, vector<184x8xf32>, vector<184x8xf32>, vector<184x8xf32>, vector<184x8xf32>, vector<184x8xf32> -> vector<184x72xf32>
    %c0_29 = arith.constant 0 : index
    %c0_30 = arith.constant 0 : index
    %29 = vector.load %arg6[%c0_29, %c0_30] : memref<72x32xf32, #tpu.memory_space<vmem>>, vector<72x32xf32>
    %cst_31 = arith.constant dense<0.000000e+00> : vector<184x32xf32>
    %30 = tpu.matmul %28, %29, %cst_31 {dimension_numbers = #tpu.dot_dimension_numbers<[1], [0], [0], [1], [0, 0, 1, 1], [], []>} : vector<184x72xf32>, vector<72x32xf32>, vector<184x32xf32> -> vector<184x32xf32>
    %c0_32 = arith.constant 0 : index
    %c0_33 = arith.constant 0 : index
    %31 = vector.load %arg7[%c0_32, %c0_33] : memref<1x32xf32, #tpu.memory_space<vmem>>, vector<1x32xf32>
    %32 = vector.broadcast %31 : vector<1x32xf32> to vector<184x32xf32>
    %33 = arith.addf %30, %32 : vector<184x32xf32>
    %cst_34 = arith.constant 0.000000e+00 : f32
    %34 = vector.broadcast %cst_34 : f32 to vector<184x32xf32>
    %35 = arith.maximumf %33, %34 : vector<184x32xf32>
    %36 = vector.extract_strided_slice %35 {offsets = [0, 0], sizes = [16, 32], strides = [1, 1]} : vector<184x32xf32> to vector<16x32xf32>
    %c0_35 = arith.constant 0 : index
    %c0_36 = arith.constant 0 : index
    %c0_37 = arith.constant 0 : index
    %c0_38 = arith.constant 0 : index
    %37 = vector.load %arg8[%c0_35, %c0_36, %c0_37, %c0_38] : memref<1x8x16x32xf32, #tpu.memory_space<vmem>>, vector<1x1x16x32xf32>
    %38 = vector.shape_cast %37 : vector<1x1x16x32xf32> to vector<16x32xf32>
    %39 = vector.shape_cast %36 : vector<16x32xf32> to vector<1x1x16x32xf32>
    tpu.vector_store %arg8[%c0_35, %c0_36, %c0_37, %c0_38], %39 {strides = array<i32>} : memref<1x8x16x32xf32, #tpu.memory_space<vmem>>, vector<1x1x16x32xf32>,
    %40 = vector.extract_strided_slice %35 {offsets = [24, 0], sizes = [16, 32], strides = [1, 1]} : vector<184x32xf32> to vector<16x32xf32>
    %c0_39 = arith.constant 0 : index
    %c1_40 = arith.constant 1 : index
    %c0_41 = arith.constant 0 : index
    %c0_42 = arith.constant 0 : index
    %41 = vector.load %arg8[%c0_39, %c1_40, %c0_41, %c0_42] : memref<1x8x16x32xf32, #tpu.memory_space<vmem>>, vector<1x1x16x32xf32>
    %42 = vector.shape_cast %41 : vector<1x1x16x32xf32> to vector<16x32xf32>
    %43 = vector.shape_cast %40 : vector<16x32xf32> to vector<1x1x16x32xf32>
    tpu.vector_store %arg8[%c0_39, %c1_40, %c0_41, %c0_42], %43 {strides = array<i32>} : memref<1x8x16x32xf32, #tpu.memory_space<vmem>>, vector<1x1x16x32xf32>,
    %44 = vector.extract_strided_slice %35 {offsets = [48, 0], sizes = [16, 32], strides = [1, 1]} : vector<184x32xf32> to vector<16x32xf32>
    %c0_43 = arith.constant 0 : index
    %c2_44 = arith.constant 2 : index
    %c0_45 = arith.constant 0 : index
    %c0_46 = arith.constant 0 : index
    %45 = vector.load %arg8[%c0_43, %c2_44, %c0_45, %c0_46] : memref<1x8x16x32xf32, #tpu.memory_space<vmem>>, vector<1x1x16x32xf32>
    %46 = vector.shape_cast %45 : vector<1x1x16x32xf32> to vector<16x32xf32>
    %47 = vector.shape_cast %44 : vector<16x32xf32> to vector<1x1x16x32xf32>
    tpu.vector_store %arg8[%c0_43, %c2_44, %c0_45, %c0_46], %47 {strides = array<i32>} : memref<1x8x16x32xf32, #tpu.memory_space<vmem>>, vector<1x1x16x32xf32>,
    %48 = vector.extract_strided_slice %35 {offsets = [72, 0], sizes = [16, 32], strides = [1, 1]} : vector<184x32xf32> to vector<16x32xf32>
    %c0_47 = arith.constant 0 : index
    %c3 = arith.constant 3 : index
    %c0_48 = arith.constant 0 : index
    %c0_49 = arith.constant 0 : index
    %49 = vector.load %arg8[%c0_47, %c3, %c0_48, %c0_49] : memref<1x8x16x32xf32, #tpu.memory_space<vmem>>, vector<1x1x16x32xf32>
    %50 = vector.shape_cast %49 : vector<1x1x16x32xf32> to vector<16x32xf32>
    %51 = vector.shape_cast %48 : vector<16x32xf32> to vector<1x1x16x32xf32>
    tpu.vector_store %arg8[%c0_47, %c3, %c0_48, %c0_49], %51 {strides = array<i32>} : memref<1x8x16x32xf32, #tpu.memory_space<vmem>>, vector<1x1x16x32xf32>,
    %52 = vector.extract_strided_slice %35 {offsets = [96, 0], sizes = [16, 32], strides = [1, 1]} : vector<184x32xf32> to vector<16x32xf32>
    %c0_50 = arith.constant 0 : index
    %c4 = arith.constant 4 : index
    %c0_51 = arith.constant 0 : index
    %c0_52 = arith.constant 0 : index
    %53 = vector.load %arg8[%c0_50, %c4, %c0_51, %c0_52] : memref<1x8x16x32xf32, #tpu.memory_space<vmem>>, vector<1x1x16x32xf32>
    %54 = vector.shape_cast %53 : vector<1x1x16x32xf32> to vector<16x32xf32>
    %55 = vector.shape_cast %52 : vector<16x32xf32> to vector<1x1x16x32xf32>
    tpu.vector_store %arg8[%c0_50, %c4, %c0_51, %c0_52], %55 {strides = array<i32>} : memref<1x8x16x32xf32, #tpu.memory_space<vmem>>, vector<1x1x16x32xf32>,
    %56 = vector.extract_strided_slice %35 {offsets = [120, 0], sizes = [16, 32], strides = [1, 1]} : vector<184x32xf32> to vector<16x32xf32>
    %c0_53 = arith.constant 0 : index
    %c5 = arith.constant 5 : index
    %c0_54 = arith.constant 0 : index
    %c0_55 = arith.constant 0 : index
    %57 = vector.load %arg8[%c0_53, %c5, %c0_54, %c0_55] : memref<1x8x16x32xf32, #tpu.memory_space<vmem>>, vector<1x1x16x32xf32>
    %58 = vector.shape_cast %57 : vector<1x1x16x32xf32> to vector<16x32xf32>
    %59 = vector.shape_cast %56 : vector<16x32xf32> to vector<1x1x16x32xf32>
    tpu.vector_store %arg8[%c0_53, %c5, %c0_54, %c0_55], %59 {strides = array<i32>} : memref<1x8x16x32xf32, #tpu.memory_space<vmem>>, vector<1x1x16x32xf32>,
    %60 = vector.extract_strided_slice %35 {offsets = [144, 0], sizes = [16, 32], strides = [1, 1]} : vector<184x32xf32> to vector<16x32xf32>
    %c0_56 = arith.constant 0 : index
    %c6 = arith.constant 6 : index
    %c0_57 = arith.constant 0 : index
    %c0_58 = arith.constant 0 : index
    %61 = vector.load %arg8[%c0_56, %c6, %c0_57, %c0_58] : memref<1x8x16x32xf32, #tpu.memory_space<vmem>>, vector<1x1x16x32xf32>
    %62 = vector.shape_cast %61 : vector<1x1x16x32xf32> to vector<16x32xf32>
    %63 = vector.shape_cast %60 : vector<16x32xf32> to vector<1x1x16x32xf32>
    tpu.vector_store %arg8[%c0_56, %c6, %c0_57, %c0_58], %63 {strides = array<i32>} : memref<1x8x16x32xf32, #tpu.memory_space<vmem>>, vector<1x1x16x32xf32>,
    %64 = vector.extract_strided_slice %35 {offsets = [168, 0], sizes = [16, 32], strides = [1, 1]} : vector<184x32xf32> to vector<16x32xf32>
    %c0_59 = arith.constant 0 : index
    %c7 = arith.constant 7 : index
    %c0_60 = arith.constant 0 : index
    %c0_61 = arith.constant 0 : index
    %65 = vector.load %arg8[%c0_59, %c7, %c0_60, %c0_61] : memref<1x8x16x32xf32, #tpu.memory_space<vmem>>, vector<1x1x16x32xf32>
    %66 = vector.shape_cast %65 : vector<1x1x16x32xf32> to vector<16x32xf32>
    %67 = vector.shape_cast %64 : vector<16x32xf32> to vector<1x1x16x32xf32>
    tpu.vector_store %arg8[%c0_59, %c7, %c0_60, %c0_61], %67 {strides = array<i32>} : memref<1x8x16x32xf32, #tpu.memory_space<vmem>>, vector<1x1x16x32xf32>,
    return
  }
  func.func @transform_0(%arg0: i32, %arg1: i32) -> (i32, i32, i32) {
    %c0_i32 = arith.constant 0 : i32
    %c0_i32_0 = arith.constant 0 : i32
    return %arg0, %arg1, %c0_i32 : i32, i32, i32
  }
  func.func @transform_1(%arg0: i32, %arg1: i32) -> (i32, i32, i32) {
    %c1_i32 = arith.constant 1 : i32
    %0 = arith.addi %arg1, %c1_i32 : i32
    %c8_i32 = arith.constant 8 : i32
    %1 = arith.muli %0, %c8_i32 : i32
    %c0_i32 = arith.constant 0 : i32
    %c0_i32_0 = arith.constant 0 : i32
    return %arg0, %1, %c0_i32 : i32, i32, i32
  }
  func.func @transform_2(%arg0: i32, %arg1: i32) -> (i32, i32, i32) {
    %c1_i32 = arith.constant 1 : i32
    %0 = arith.addi %arg1, %c1_i32 : i32
    %c8_i32 = arith.constant 8 : i32
    %1 = arith.muli %0, %c8_i32 : i32
    %c1_i32_0 = arith.constant 1 : i32
    %2 = arith.addi %1, %c1_i32_0 : i32
    %c0_i32 = arith.constant 0 : i32
    %c0_i32_1 = arith.constant 0 : i32
    return %arg0, %2, %c0_i32 : i32, i32, i32
  }
  func.func @transform_3(%arg0: i32, %arg1: i32) -> (i32, i32) {
    %c0_i32 = arith.constant 0 : i32
    %c0_i32_0 = arith.constant 0 : i32
    %c0_i32_1 = arith.constant 0 : i32
    return %c0_i32, %c0_i32_0 : i32, i32
  }
  func.func @transform_4(%arg0: i32, %arg1: i32) -> (i32, i32) {
    %c0_i32 = arith.constant 0 : i32
    %c0_i32_0 = arith.constant 0 : i32
    %c0_i32_1 = arith.constant 0 : i32
    return %c0_i32, %c0_i32_0 : i32, i32
  }
  func.func @transform_5(%arg0: i32, %arg1: i32) -> (i32, i32) {
    %c0_i32 = arith.constant 0 : i32
    %c0_i32_0 = arith.constant 0 : i32
    %c0_i32_1 = arith.constant 0 : i32
    return %c0_i32, %c0_i32_0 : i32, i32
  }
  func.func @transform_6(%arg0: i32, %arg1: i32) -> (i32, i32, i32, i32) {
    %c0_i32 = arith.constant 0 : i32
    %c0_i32_0 = arith.constant 0 : i32
    %c0_i32_1 = arith.constant 0 : i32
    return %arg0, %arg1, %c0_i32, %c0_i32_0 : i32, i32, i32, i32
  }
}

</mosaic_0001>

<bundles_post_ra>
// kernel: tpu_custom_call.1
= control target key start
LH: loop header
LB: loop body
LE: loop exit
PB: predicated region body
PF: predicated region fallthrough
CT: control target
= control target key end

     0   :  { %11 = vsyncpa [#allocation4], 0  ;;  %s3501_s0 = inlined_call_operand.vmem [shape: f32[2,432,5], index: 0, kind: input, shape index: {}]   ;;  %s3502_s1 = inlined_call_operand.vmem [shape: f32[2,432,5], index: 1, kind: input, shape index: {}]   ;;  %s3503_s2 = inlined_call_operand.vmem [shape: f32[2,432,5], index: 2, kind: input, shape index: {}]   ;;  %s3504_s3 = inlined_call_operand.vmem [shape: f32[5,8], index: 3, kind: input, shape index: {}]   ;;  %s3505_s4 = inlined_call_operand.vmem [shape: f32[72,32], index: 4, kind: input, shape index: {}]   ;;  %s3506_s5 = inlined_call_operand.vmem [shape: f32[1,32], index: 5, kind: input, shape index: {}]   ;;  %s3507_s6 = inlined_call_operand.hbm [shape: f32[2,16,16,32], index: 6, kind: output, shape index: {}]  }
   0x1   :  { %13 = vsyncpa [#allocation4 + $0x1], 0  ;;  %s2338_s21 = smov 0   ;;  %s2340_s22 = smov 0  }
   0x2   :  { %s2342_s23 = smov 0   ;;  %s2344_s24 = smov 0  }
   0x3   :  { %s2346_s25 = smov 0   ;;  %s2348_s26 = smov 0  }
   0x4   :  { %s2350_s27 = smov 0   ;;  %s2352_s28 = smov 0  }
   0x5 LB: > { %s1988_s29 = sadd.s32 4294967295, %s2292_s28   ;;  %s1989_s30 = sadd.s32 4294967294, %s2292_s28   ;;  %s2292_s28 = sphi %s2352_s28, %s19_s28   ;;  %s2288_s27 = sphi %s2350_s27, %s3601_s27   ;;  %s2284_s26 = sphi %s2348_s26, %s3600_s26   ;;  %s2280_s25 = sphi %s2346_s25, %s3599_s25   ;;  %s2276_s24 = sphi %s2344_s24, %s3598_s24   ;;  %s2272_s23 = sphi %s2342_s23, %s3597_s23   ;;  %s2268_s22 = sphi %s2340_s22, %s3596_s22   ;;  %s2264_s21 = sphi %s2338_s21, %s3595_s21  }
   0x6   : > { %s28_s7 = sadd.s32 1, %s2284_s26  ;;  %s31_s8 = sadd.s32 1, %s2288_s27 }
   0x7   : > { %p29_p0 = scmp.ge.s32.totalorder %s28_s7, 2  ;;  %p207_p1 = scmp.ne.s32.totalorder %s2272_s23, %s2268_s22 }
   0x8   : > { %p208_p2 = scmp.eq.s32.totalorder %s1988_s29, 3  ;;  %p213_p5 = scmp.ne.s32.totalorder %s2268_s22, %s2264_s21 }
   0x9   : > { %s3603_s7 = smov (%p29_p0, %s28_s7), 0  ;;  %s3605_s8 = smov (!%p29_p0, %s31_s8), %s2288_s27 }
   0xa   : > { %s193_s9 = ssub.s32 %s2284_s26, %s3603_s7  ;;  %p2389_p3 = por %p208_p2, %p207_p1 }
   0xb   : > { %p33_p4 = scmp.ge.s32.totalorder %s3605_s8, 2  ;;  %p214_p6 = scmp.eq.s32.totalorder %s1989_s30, 3 }
   0xc   : > { %p1996_p7 = scmp.ge.s32.totalorder %s2292_s28, 1  ;;  %p298_p9 = scmp.lt.s32.totalorder %s2292_s28, 5 }
   0xd   : > { %s3607_s8 = smov (%p33_p4, %s3605_s8), 0  ;;  %p2398_p8 = por %p214_p6, %p213_p5 }
   0xe   : > { %s192_s12 = ssub.s32 %s2288_s27, %s3607_s8  ;;  %s197_s13 = sadd.s32 1, %s2272_s23 }
   0xf   : > { %s194_s14 = sor.u32 %s193_s9, %s192_s12  ;;  %p299_p10 = pnand %p1996_p7, %p298_p9 }
  0x10   : > { %p195_p11 = scmp.eq.s32.totalorder %s194_s14, 0 }
  0x11   : > { %302 = sbr.rel (%p299_p10) target bundleno = 912 (0x390), region = 44 }
  0x12   : > { %s2407_s15 = scalar_select %p195_p11, %s2272_s23, %s197_s13  }
  0x16   : > { %v408_v0 = vld [vmem:[%s3504_s3] sm:$0x1f]  ;;  %vm506_vm0 = vcmask 1044480   ;;  %s359_s18 = smul.u32 24, %s2276_s24  ;;  %p364_p12 = scmp.lt.s32.totalorder %s2280_s25, 1  ;;  %vm433_vm1 = vcmask 39936  }
  0x17   : > { %2004 = vmatpush.msk.msra.mxu0 %vm506_vm0, %v408_v0  ;;  %2094 = vmatpush.msk.msra.mxu2 %vm506_vm0, %v408_v0  ;;  %s377_s19 = sadd.s32 1, %s2276_s24  ;;  %vm623_vm2 = vcmask 64512   ;;  %vm1482_vm3 = vcmask 130048   ;;  %vm1506_vm4 = vcmask 195584   ;;  %vm1530_vm5 = vcmask 261120  }
  0x18   : > { %s365_s20 = scalar_select %p364_p12, %s2280_s25, 1  ;;  %2029 = vmatpush.msk.msra.mxu1 %vm506_vm0, %v408_v0  ;;  %vm1554_vm6 = vcmask 326656   ;;  %vm1578_vm7 = vcmask 392192   ;;  %vm1602_vm8 = vcmask 457728   ;;  %vm1626_vm9 = vcmask 523264  }
  0x19   : > { %2033 = vmatpush.msk.msrb.mxu2 %vm506_vm0, %v408_v0  ;;  %p366_p13 = scmp.lt.s32.totalorder %s359_s18, 53  ;;  %s2000_s29 = smul.u32 24, %s377_s19  ;;  %vm1663_vm10 = vcmask 588800  }
  0x1a   : > { %s2416_s30 = smul.u32 54, %s365_s20  ;;  %s2093_s20 = sshll.u32 %s2276_s24, 4 }
  0x1b   : > { %s3609_s18 = smov (!%p366_p13, %s359_s18), 53  ;;  %p382_p0 = scmp.lt.s32.totalorder %s2000_s29, 53 }
  0x1c   : > { %s369_s9 = sadd.s32 %s2416_s30, %s3609_s18 }
  0x1d   : > { %s1998_s12 = sshll.u32 %s369_s9, 3  ;;  %s3611_s29 = smov (!%p382_p0, %s2000_s29), 53 }
  0x1e   : > { %s2422_s16 = scalar_lea.vmem %s3501_s0, %s1998_s12  ;;  %s385_s17 = sadd.s32 %s2416_s30, %s3611_s29 }
  0x1f   : > { %v409_v1 = vld [vmem:[%s2422_s16] sm:$0xff]  ;;  %v423_v2 = vld [vmem:[%s2422_s16 + $0x70] sm:$0xff]  ;;  %s2001_s18 = sshll.u32 %s385_s17, 3  ;;  %v410_v4 = vld [vmem:[%s2422_s16 + $0x8] sm:$0xff]  ;;  %s2091_s29 = sshll.u32 %s2276_s24, 3 }
  0x20   : > { %2005 = vmatmul.msk.f32.vlgmr.msra.gmra.mxu0 %vm433_vm1, %v409_v1  ;;  %2019 = vmatmul.msk.f32.vlgmr.msra.gmra.mxu2 %vm433_vm1, %v423_v2  ;;  %s387_s9 = scalar_lea.vmem %s3502_s1, %s2001_s18  ;;  %v424_v5 = vld [vmem:[%s2422_s16 + $0x78] sm:$0xff]  ;;  %v411_v7 = vld [vmem:[%s2422_s16 + $0x10] sm:$0xff]  ;;  %v425_v8 = vld [vmem:[%s2422_s16 + $0x80] sm:$0xff]  ;;  %s2092_s12 = sadd.s32 8, %s2091_s29 }
  0x21   : > { %v648_v3 = vld [vmem:[%s387_s9] sm:$0xff]  ;;  %v649_v6 = vld [vmem:[%s387_s9 + $0x8] sm:$0xff]  ;;  %v650_v9 = vld [vmem:[%s387_s9 + $0x10] sm:$0xff]  ;;  %s393_s13 = sadd.s32 1, %s2092_s12  ;;  %s2296_s29 = smov 8  }
  0x22   : > { %2030 = vmatmul.msk.f32.vlgmr.msra.gmra.mxu1 %vm433_vm1, %v648_v3  ;;  %v412_v10 = vld [vmem:[%s2422_s16 + $0x18] sm:$0xff]  ;;  %v426_v11 = vld [vmem:[%s2422_s16 + $0x88] sm:$0xff]  ;;  %v413_v12 = vld [vmem:[%s2422_s16 + $0x20] sm:$0xff]  ;;  %s394_s14 = smul.u32 3, %s393_s13  ;;  %s2297_s12 = smov 32  }
  0x23   : > { %v427_v13 = vld [vmem:[%s2422_s16 + $0x90] sm:$0xff]  ;;  %v414_v14 = vld [vmem:[%s2422_s16 + $0x28] sm:$0xff]  ;;  %v428_v15 = vld [vmem:[%s2422_s16 + $0x98] sm:$0xff]  ;;  %s2298_s13 = smov 40  }
  0x24   : > { %v415_v16 = vld [vmem:[%s2422_s16 + $0x30] sm:$0xff]  ;;  %v429_v17 = vld [vmem:[%s2422_s16 + $0xa0] sm:$0xff]  ;;  %v416_v18 = vld [vmem:[%s2422_s16 + $0x38] sm:$0xff]  ;;  %p397_p1 = scmp.lt.s32.totalorder %s394_s14, 53 }
  0x25   : > { %v430_v19 = vld [vmem:[%s2422_s16 + $0xa8] sm:$0xff]  ;;  %v417_v20 = vld [vmem:[%s2422_s16 + $0x40] sm:$0xff]  ;;  %v431_v21 = vld [vmem:[%s2422_s16 + $0xb0] sm:$0xff] }
  0x26   : > { %s3613_s14 = smov (!%p397_p1, %s394_s14), 53  ;;  %v418_v22 = vld [vmem:[%s2422_s16 + $0x48] sm:$0xff]  ;;  %v432_v23 = vld [vmem:[%s2422_s16 + $0xb8] sm:$0xff]  ;;  %v419_v24 = vld [vmem:[%s2422_s16 + $0x50] sm:$0xff] }
  0x27   : > { %s400_s17 = sadd.s32 %s2416_s30, %s3613_s14  ;;  %v420_v26 = vld [vmem:[%s2422_s16 + $0x58] sm:$0xff]  ;;  %v421_v27 = vld [vmem:[%s2422_s16 + $0x60] sm:$0xff]  ;;  %v422_v28 = vld [vmem:[%s2422_s16 + $0x68] sm:$0xff]  ;;  %s2294_s30 = smov 24  }
  0x28   : > { %2006 = vmatmul.msk.f32.gmra.mxu0 %vm433_vm1, %v410_v4  ;;  %2020 = vmatmul.msk.f32.gmra.mxu2 %vm433_vm1, %v424_v5  ;;  %s2003_s18 = sshll.u32 %s400_s17, 3  ;;  %s2295_s16 = smov 16  }
  0x29   : > { %s2476_s9 = scalar_lea.vmem %s3503_s2, %s2003_s18  ;;  %s2299_s14 = smov 56  }
  0x2a   : > { %2031 = vmatmul.msk.f32.gmra.mxu1 %vm433_vm1, %v649_v6  ;;  %v692_v25 = vld [vmem:[%s2476_s9] sm:$0xff]  ;;  %s2300_s17 = smov 48   ;;  %s2301_s18 = smov 64  }
  0x30   : > { %2007 = vmatmul.msk.f32.gmra.mxu0 %vm433_vm1, %v411_v7  ;;  %2021 = vmatmul.msk.f32.gmra.mxu2 %vm433_vm1, %v425_v8 }
  0x32   : > { %2032 = vmatmul.msk.f32.gmra.mxu1 %vm433_vm1, %v650_v9 }
  0x38   : > { %2008 = vmatmul.msk.f32.gmra.mxu0 %vm433_vm1, %v412_v10  ;;  %2022 = vmatmul.msk.f32.gmra.mxu2 %vm433_vm1, %v426_v11 }
  0x40   : > { %2009 = vmatmul.msk.f32.gmra.mxu0 %vm433_vm1, %v413_v12  ;;  %2023 = vmatmul.msk.f32.gmra.mxu2 %vm433_vm1, %v427_v13 }
  0x48   : > { %2010 = vmatmul.msk.f32.gmra.mxu0 %vm433_vm1, %v414_v14  ;;  %2024 = vmatmul.msk.f32.gmra.mxu2 %vm433_vm1, %v428_v15 }
  0x50   : > { %2011 = vmatmul.msk.f32.gmra.mxu0 %vm433_vm1, %v415_v16  ;;  %2025 = vmatmul.msk.f32.gmra.mxu2 %vm433_vm1, %v429_v17 }
  0x58   : > { %2012 = vmatmul.msk.f32.gmra.mxu0 %vm433_vm1, %v416_v18  ;;  %2026 = vmatmul.msk.f32.gmra.mxu2 %vm433_vm1, %v430_v19 }
  0x60   : > { %2013 = vmatmul.msk.f32.gmra.mxu0 %vm433_vm1, %v417_v20  ;;  %2027 = vmatmul.msk.f32.gmra.mxu2 %vm433_vm1, %v431_v21 }
  0x68   : > { %2014 = vmatmul.msk.f32.gmra.mxu0 %vm433_vm1, %v418_v22  ;;  %2028 = vmatmul.msk.f32.gmra.mxu2 %vm433_vm1, %v432_v23 }
  0x70   : > { %2015 = vmatmul.msk.f32.gmra.mxu0 %vm433_vm1, %v419_v24  ;;  %2034 = vmatmul.msk.f32.vlgmr.msrb.gmra.mxu2 %vm433_vm1, %v692_v25 }
  0x78   : > { %2016 = vmatmul.msk.f32.gmra.mxu0 %vm433_vm1, %v420_v26 }
  0x80   : > { %2017 = vmatmul.msk.f32.gmra.mxu0 %vm433_vm1, %v421_v27 }
  0x88   : > { %2018 = vmatmul.msk.f32.gmra.mxu0 %vm433_vm1, %v422_v28 }
  0x9d   : > { %v527_v29 = vpop.f32.mrf.mxu0 }
  0x9e   : > { %v599_v30 = vmax.f32 %v527_v29, 0.0 }
  0x9f   : > { %v677_v31 = vpop.f32.mrf.mxu1 }
  0xa0   : > { %624 = vst.msk [vmem:[#allocation2] sm:$0xff] %vm623_vm2, %v599_v30  ;;  %v686_v32 = vmax.f32 %v677_v31, 0.0 }
  0xa2   : > { %689 = vst.msk [vmem:[#allocation2 + $0xc0] sm:$0xff] %vm623_vm2, %v686_v32 }
  0xa3   : > { %v569_v33 = vpop.f32.mrf.mxu2 }
  0xa4   : > { %v613_v34 = vmax.f32 %v569_v33, 0.0 }
  0xa5   : > { %v530_v35 = vpop.f32.mrf.mxu0 }
  0xa6   : > { %638 = vst.msk [vmem:[#allocation2 + $0x70] sm:$0xff] %vm623_vm2, %v613_v34  ;;  %v600_v36 = vmax.f32 %v530_v35, 0.0 }
  0xa7   : > { %v680_v37 = vpop.f32.mrf.mxu1 }
  0xa8   : > { %625 = vst.msk [vmem:[#allocation2 + $0x8] sm:$0xff] %vm623_vm2, %v600_v36  ;;  %v687_v38 = vmax.f32 %v680_v37, 0.0 }
  0xa9   : > { %v806_v41 = vld [vmem:[#allocation2 + $0xc0] sm:$0xff] }
  0xaa   : > { %690 = vst.msk [vmem:[#allocation2 + $0xc8] sm:$0xff] %vm623_vm2, %v687_v38  ;;  %1072 = vrot.lane.b32.xlu1 %v806_v41, %s2294_s30 }
  0xab   : > { %v572_v39 = vpop.f32.mrf.mxu2 }
  0xac   : > { %v614_v40 = vmax.f32 %v572_v39, 0.0 }
  0xad   : > { %v533_v42 = vpop.f32.mrf.mxu0  ;;  %v750_v43 = vld [vmem:[#allocation2 + $0x70] sm:$0xff] }
  0xae   : > { %639 = vst.msk [vmem:[#allocation2 + $0x78] sm:$0xff] %vm623_vm2, %v614_v40  ;;  %v601_v44 = vmax.f32 %v533_v42, 0.0  ;;  %1052 = vrot.lane.b32.xlu0 %v750_v43, %s2294_s30 }
  0xaf   : > { %v782_v45 = vld [vmem:[#allocation2 + $0x2] sm:$0xff]  ;;  %v683_v46 = vpop.f32.mrf.mxu1 }
  0xb0   : > { %626 = vst.msk [vmem:[#allocation2 + $0x10] sm:$0xff] %vm623_vm2, %v601_v44  ;;  %938 = vrot.lane.b32.xlu2 %v782_v45, %s2295_s16  ;;  %v688_v48 = vmax.f32 %v683_v46, 0.0  ;;  %v759_v52 = vld [vmem:[#allocation2 + $0x1] sm:$0xff] }
  0xb1   : > { %v807_v53 = vld [vmem:[#allocation2 + $0xc8] sm:$0xff] }
  0xb2   : > { %691 = vst.msk [vmem:[#allocation2 + $0xd0] sm:$0xff] %vm623_vm2, %v688_v48  ;;  %v2504_v59 = vld [vmem:[#allocation2 + $0xc1] sm:$0xff] }
  0xb3   : > { %v575_v47 = vpop.f32.mrf.mxu2  ;;  %3521 = vst [vmem:[#allocation6_spill] sm:$0xff] %v2504_v59 }
  0xb4   : > { %v615_v49 = vmax.f32 %v575_v47, 0.0 }
  0xb5   : > { %v536_v50 = vpop.f32.mrf.mxu0  ;;  %v796_v51 = vld [vmem:[#allocation2 + $0x72] sm:$0xff] }
  0xb6   : > { %640 = vst.msk [vmem:[#allocation2 + $0x80] sm:$0xff] %vm623_vm2, %v615_v49  ;;  %v602_v54 = vmax.f32 %v536_v50, 0.0  ;;  %966 = vrot.lane.b32.xlu1 %v796_v51, %s2295_s16  ;;  %846 = vrot.lane.b32.xlu0 %v759_v52, %s2296_s29  ;;  %v751_v58 = vld [vmem:[#allocation2 + $0x78] sm:$0xff] }
  0xb7   : > { %v773_v61 = vld [vmem:[#allocation2 + $0x71] sm:$0xff]  ;;  %v760_v2 = vld [vmem:[#allocation2 + $0x9] sm:$0xff] }
  0xb8   : > { %627 = vst.msk [vmem:[#allocation2 + $0x18] sm:$0xff] %vm623_vm2, %v602_v54  ;;  %1074 = vrot.lane.b32.xlu2 %v807_v53, %s2294_s30  ;;  %v783_v7 = vld [vmem:[#allocation2 + $0xa] sm:$0xff] }
  0xb9   : > { %v810_v1 = vld [vmem:[#allocation2 + $0xc9] sm:$0xff] }
  0xbb   : > { %v578_v55 = vpop.f32.mrf.mxu2 }
  0xbc   : > { %v616_v56 = vmax.f32 %v578_v55, 0.0 }
  0xbd   : > { %v539_v57 = vpop.f32.mrf.mxu0  ;;  %v774_v13 = vld [vmem:[#allocation2 + $0x79] sm:$0xff] }
  0xbe   : > { %641 = vst.msk [vmem:[#allocation2 + $0x88] sm:$0xff] %vm623_vm2, %v616_v56  ;;  %v603_v60 = vmax.f32 %v539_v57, 0.0  ;;  %1054 = vrot.lane.b32.xlu1 %v751_v58, %s2294_s30  ;;  %1144 = vrot.lane.b32.xlu0 %v2504_v59, %s2297_s12  ;;  %v2525_v16 = vld [vmem:[#allocation2 + $0x7a] sm:$0xff] }
  0xbf   : > { %v761_v8 = vld [vmem:[#allocation2 + $0x11] sm:$0xff]  ;;  %v2536_v22 = vld [vmem:[#allocation2 + $0x80] sm:$0xff] }
  0xc0   : > { %628 = vst.msk [vmem:[#allocation2 + $0x20] sm:$0xff] %vm623_vm2, %v603_v60  ;;  %874 = vrot.lane.b32.xlu2 %v773_v61, %s2296_s29  ;;  %v784_v14 = vld [vmem:[#allocation2 + $0x12] sm:$0xff] }
  0xc1   : > { %v2530_v20 = vld [vmem:[#allocation2 + $0x18] sm:$0xff] }
  0xc3   : > { %v581_v62 = vpop.f32.mrf.mxu2 }
  0xc4   : > { %v617_v63 = vmax.f32 %v581_v62, 0.0 }
  0xc5   : > { %v542_v0 = vpop.f32.mrf.mxu0  ;;  %v2541_v26 = vld [vmem:[#allocation2 + $0x82] sm:$0xff] }
  0xc6   : > { %642 = vst.msk [vmem:[#allocation2 + $0x90] sm:$0xff] %vm623_vm2, %v617_v63  ;;  %v604_v3 = vmax.f32 %v542_v0, 0.0  ;;  %1146 = vrot.lane.b32.xlu1 %v810_v1, %s2297_s12  ;;  %848 = vrot.lane.b32.xlu0 %v760_v2, %s2296_s29  ;;  %v775_v27 = vld [vmem:[#allocation2 + $0x81] sm:$0xff] }
  0xc7   : > { %v785_v29 = vld [vmem:[#allocation2 + $0x1a] sm:$0xff]  ;;  %v2549_v33 = vld [vmem:[#allocation2 + $0x88] sm:$0xff] }
  0xc8   : > { %629 = vst.msk [vmem:[#allocation2 + $0x28] sm:$0xff] %vm623_vm2, %v604_v3  ;;  %1124 = vrot.lane.b32.xlu2 %v773_v61, %s2297_s12  ;;  %v2551_v34 = vld [vmem:[#allocation2 + $0x20] sm:$0xff] }
  0xc9   : > { %v762_v39 = vld [vmem:[#allocation2 + $0x19] sm:$0xff] }
  0xcb   : > { %v584_v4 = vpop.f32.mrf.mxu2 }
  0xcc   : > { %v618_v5 = vmax.f32 %v584_v4, 0.0 }
  0xcd   : > { %v545_v6 = vpop.f32.mrf.mxu0  ;;  %v2565_v42 = vld [vmem:[#allocation2 + $0x8a] sm:$0xff] }
  0xce   : > { %643 = vst.msk [vmem:[#allocation2 + $0x98] sm:$0xff] %vm623_vm2, %v618_v5  ;;  %v605_v9 = vmax.f32 %v545_v6, 0.0  ;;  %940 = vrot.lane.b32.xlu0 %v783_v7, %s2295_s16  ;;  %850 = vrot.lane.b32.xlu1 %v761_v8, %s2296_s29  ;;  %v2570_v45 = vld [vmem:[#allocation2 + $0x89] sm:$0xff] }
  0xcf   : > { %v786_v43 = vld [vmem:[#allocation2 + $0x22] sm:$0xff]  ;;  %v2575_v47 = vld [vmem:[#allocation2 + $0x90] sm:$0xff] }
  0xd0   : > { %630 = vst.msk [vmem:[#allocation2 + $0x30] sm:$0xff] %vm623_vm2, %v605_v9  ;;  %1196 = vrot.lane.b32.xlu2 %v796_v51, %s2298_s13  ;;  %v2577_v48 = vld [vmem:[#allocation2 + $0x28] sm:$0xff] }
  0xd1   : > { %v763_v51 = vld [vmem:[#allocation2 + $0x21] sm:$0xff] }
  0xd3   : > { %v587_v10 = vpop.f32.mrf.mxu2 }
  0xd4   : > { %v619_v11 = vmax.f32 %v587_v10, 0.0 }
  0xd5   : > { %v548_v12 = vpop.f32.mrf.mxu0  ;;  %v2593_v53 = vld [vmem:[#allocation2 + $0x91] sm:$0xff] }
  0xd6   : > { %644 = vst.msk [vmem:[#allocation2 + $0xa0] sm:$0xff] %vm623_vm2, %v619_v11  ;;  %v606_v15 = vmax.f32 %v548_v12, 0.0  ;;  %876 = vrot.lane.b32.xlu0 %v774_v13, %s2296_s29  ;;  %942 = vrot.lane.b32.xlu1 %v784_v14, %s2295_s16  ;;  %v2598_v55 = vld [vmem:[#allocation2 + $0x92] sm:$0xff] }
  0xd7   : > { %v787_v54 = vld [vmem:[#allocation2 + $0x2a] sm:$0xff]  ;;  %v2612_v60 = vld [vmem:[#allocation2 + $0x98] sm:$0xff] }
  0xd8   : > { %631 = vst.msk [vmem:[#allocation2 + $0x38] sm:$0xff] %vm623_vm2, %v606_v15  ;;  %968 = vrot.lane.b32.xlu2 %v2525_v16, %s2295_s16  ;;  %v2604_v57 = vld [vmem:[#allocation2 + $0x30] sm:$0xff] }
  0xd9   : > { %v764_v0 = vld [vmem:[#allocation2 + $0x29] sm:$0xff] }
  0xdb   : > { %v590_v17 = vpop.f32.mrf.mxu2 }
  0xdc   : > { %v620_v18 = vmax.f32 %v590_v17, 0.0 }
  0xdd   : > { %v551_v19 = vpop.f32.mrf.mxu0  ;;  %v2620_v63 = vld [vmem:[#allocation2 + $0x9a] sm:$0xff] }
  0xde   : > { %645 = vst.msk [vmem:[#allocation2 + $0xa8] sm:$0xff] %vm623_vm2, %v620_v18  ;;  %v607_v21 = vmax.f32 %v551_v19, 0.0  ;;  %1126 = vrot.lane.b32.xlu0 %v774_v13, %s2297_s12  ;;  %1030 = vrot.lane.b32.xlu1 %v2530_v20, %s2294_s30  ;;  %v2632_v4 = vld [vmem:[#allocation2 + $0xa0] sm:$0xff] }
  0xdf   : > { %v2634_v5 = vld [vmem:[#allocation2 + $0x99] sm:$0xff]  ;;  %v2647_v9 = vld [vmem:[#allocation2 + $0x31] sm:$0xff] }
  0xe0   : > { %632 = vst.msk [vmem:[#allocation2 + $0x40] sm:$0xff] %vm623_vm2, %v607_v21  ;;  %1056 = vrot.lane.b32.xlu2 %v2536_v22, %s2294_s30  ;;  %v2653_v10 = vld [vmem:[#allocation2 + $0x32] sm:$0xff] }
  0xe1   : > { %v2669_v15 = vld [vmem:[#allocation2 + $0x38] sm:$0xff] }
  0xe3   : > { %v593_v23 = vpop.f32.mrf.mxu2 }
  0xe4   : > { %v621_v24 = vmax.f32 %v593_v23, 0.0 }
  0xe5   : > { %v554_v25 = vpop.f32.mrf.mxu0  ;;  %v2663_v14 = vld [vmem:[#allocation2 + $0xa2] sm:$0xff] }
  0xe6   : > { %646 = vst.msk [vmem:[#allocation2 + $0xb0] sm:$0xff] %vm623_vm2, %v621_v24  ;;  %v608_v28 = vmax.f32 %v554_v25, 0.0  ;;  %970 = vrot.lane.b32.xlu0 %v2541_v26, %s2295_s16  ;;  %878 = vrot.lane.b32.xlu1 %v775_v27, %s2296_s29  ;;  %v2679_v21 = vld [vmem:[#allocation2 + $0xa8] sm:$0xff] }
  0xe7   : > { %v2681_v23 = vld [vmem:[#allocation2 + $0x3a] sm:$0xff] }
  0xe8   : > { %633 = vst.msk [vmem:[#allocation2 + $0x48] sm:$0xff] %vm623_vm2, %v608_v28  ;;  %944 = vrot.lane.b32.xlu2 %v785_v29, %s2295_s16  ;;  %v2687_v24 = vld [vmem:[#allocation2 + $0xa1] sm:$0xff] }
  0xeb   : > { %v596_v30 = vpop.f32.mrf.mxu2 }
  0xec   : > { %v622_v31 = vmax.f32 %v596_v30, 0.0  ;;  %v2699_v30 = vld [vmem:[#allocation2 + $0x40] sm:$0xff] }
  0xed   : > { %v557_v32 = vpop.f32.mrf.mxu0 }
  0xee   : > { %647 = vst.msk [vmem:[#allocation2 + $0xb8] sm:$0xff] %vm623_vm2, %v622_v31  ;;  %v609_v35 = vmax.f32 %v557_v32, 0.0  ;;  %1058 = vrot.lane.b32.xlu0 %v2549_v33, %s2294_s30  ;;  %1128 = vrot.lane.b32.xlu1 %v775_v27, %s2297_s12 }
  0xf0   : > { %634 = vst.msk [vmem:[#allocation2 + $0x50] sm:$0xff] %vm623_vm2, %v609_v35  ;;  %1032 = vrot.lane.b32.xlu2 %v2551_v34, %s2294_s30 }
  0xf3   : > { %v721_v36 = vpop.f32.mrf.mxu2 }
  0xf4   : > { %v730_v37 = vmax.f32 %v721_v36, 0.0  ;;  %v2713_v36 = vld [vmem:[#allocation2 + $0xa9] sm:$0xff] }
  0xf5   : > { %v560_v38 = vpop.f32.mrf.mxu0 }
  0xf6   : > { %733 = vst.msk [vmem:[#allocation2 + $0xd8] sm:$0xff] %vm623_vm2, %v730_v37  ;;  %v610_v40 = vmax.f32 %v560_v38, 0.0  ;;  %1102 = vrot.lane.b32.xlu0 %v762_v39, %s2297_s12  ;;  %852 = vrot.lane.b32.xlu1 %v762_v39, %s2296_s29  ;;  %v2719_v37 = vld [vmem:[#allocation2 + $0xaa] sm:$0xff] }
  0xf8   : > { %635 = vst.msk [vmem:[#allocation2 + $0x58] sm:$0xff] %vm623_vm2, %v610_v40  ;;  %1174 = vrot.lane.b32.xlu2 %v785_v29, %s2298_s13  ;;  %v2697_v29 = vld [vmem:[#allocation2 + $0x39] sm:$0xff] }
  0xfd   : > { %v563_v41 = vpop.f32.mrf.mxu0 }
  0xfe   : > { %v611_v44 = vmax.f32 %v563_v41, 0.0  ;;  %972 = vrot.lane.b32.xlu1 %v2565_v42, %s2295_s16  ;;  %946 = vrot.lane.b32.xlu0 %v786_v43, %s2295_s16  ;;  %v2729_v41 = vld [vmem:[#allocation2 + $0x42] sm:$0xff] }
 0x100   : > { %636 = vst.msk [vmem:[#allocation2 + $0x60] sm:$0xff] %vm623_vm2, %v611_v44  ;;  %880 = vrot.lane.b32.xlu2 %v2570_v45, %s2296_s29 }
 0x105   : > { %v566_v46 = vpop.f32.mrf.mxu0 }
 0x106   : > { %v612_v49 = vmax.f32 %v566_v46, 0.0  ;;  %1060 = vrot.lane.b32.xlu1 %v2575_v47, %s2294_s30  ;;  %1034 = vrot.lane.b32.xlu0 %v2577_v48, %s2294_s30 }
 0x108   : > { %637 = vst.msk [vmem:[#allocation2 + $0x68] sm:$0xff] %vm623_vm2, %v612_v49  ;;  %1130 = vrot.lane.b32.xlu2 %v2570_v45, %s2297_s12 }
 0x10a   : > { %v2586_v50 = vpop.permute.xlu2 %938 }
 0x10b   : > { %3522 = vst [vmem:[#allocation7_spill] sm:$0xff] %v2586_v50  ;;  %v2809_v50 = vld [vmem:[#allocation2 + $0x50] sm:$0xff] }
 0x10e   : > { %1104 = vrot.lane.b32.xlu1 %v763_v51, %s2297_s12  ;;  %1176 = vrot.lane.b32.xlu0 %v786_v43, %s2298_s13  ;;  %v2735_v43 = vld [vmem:[#allocation2 + $0xb0] sm:$0xff] }
 0x110   : > { %854 = vrot.lane.b32.xlu2 %v763_v51, %s2296_s29  ;;  %v2745_v51 = vld [vmem:[#allocation2 + $0xb2] sm:$0xff] }
 0x112   : > { %v2591_v52 = vpop.permute.xlu2 %1074 }
 0x113   : > { %3523 = vst [vmem:[#allocation8_spill] sm:$0xff] %v2591_v52 }
 0x116   : > { %882 = vrot.lane.b32.xlu0 %v2593_v53, %s2296_s29  ;;  %948 = vrot.lane.b32.xlu1 %v787_v54, %s2295_s16 }
 0x118   : > { %974 = vrot.lane.b32.xlu2 %v2598_v55, %s2295_s16 }
 0x11a   : > { %v2602_v56 = vpop.permute.xlu2 %874 }
 0x11b   : > { %3524 = vst [vmem:[#allocation9_spill] sm:$0xff] %v2602_v56 }
 0x11c   : > { %v2610_v58 = vpop.permute.xlu1 %1072 }
 0x11d   : > { %3525 = vst [vmem:[#allocation10_spill] sm:$0xff] %v2610_v58  ;;  %v2763_v58 = vld [vmem:[#allocation2 + $0xb8] sm:$0xff] }
 0x11e   : > { %1132 = vrot.lane.b32.xlu0 %v2593_v53, %s2297_s12  ;;  %1036 = vrot.lane.b32.xlu1 %v2604_v57, %s2294_s30 }
 0x120   : > { %v2614_v61 = vpop.permute.xlu0 %1052  ;;  %1062 = vrot.lane.b32.xlu2 %v2612_v60, %s2294_s30 }
 0x121   : > { %3526 = vst [vmem:[#allocation11_spill] sm:$0xff] %v2614_v61  ;;  %v2841_v61 = vld [vmem:[#allocation2 + $0x61] sm:$0xff] }
 0x122   : > { %v2618_v62 = vpop.permute.xlu2 %1124 }
 0x123   : > { %3527 = vst [vmem:[#allocation12_spill] sm:$0xff] %v2618_v62  ;;  %v2825_v62 = vld [vmem:[#allocation2 + $0x5a] sm:$0xff] }
 0x124   : > { %3553 = vst [vmem:[#allocation38_spill] sm:$0xff] %v2825_v62 }
 0x126   : > { %976 = vrot.lane.b32.xlu0 %v2620_v63, %s2295_s16  ;;  %1178 = vrot.lane.b32.xlu1 %v787_v54, %s2298_s13  ;;  %v2747_v54 = vld [vmem:[#allocation2 + $0x48] sm:$0xff] }
 0x128   : > { %v2625_v1 = vpop.permute.xlu1 %966  ;;  %v2627_v2 = vpop.permute.xlu0 %846  ;;  %856 = vrot.lane.b32.xlu2 %v764_v0, %s2296_s29 }
 0x129   : > { %3528 = vst [vmem:[#allocation13_spill] sm:$0xff] %v2625_v1 }
 0x12a   : > { %3529 = vst [vmem:[#allocation14_spill] sm:$0xff] %v2627_v2  ;;  %v2630_v3 = vpop.permute.xlu2 %1196 }
 0x12b   : > { %3530 = vst [vmem:[#allocation15_spill] sm:$0xff] %v2630_v3 }
 0x12e   : > { %1064 = vrot.lane.b32.xlu0 %v2632_v4, %s2294_s30  ;;  %884 = vrot.lane.b32.xlu1 %v2634_v5, %s2296_s29 }
 0x130   : > { %v2640_v6 = vpop.permute.xlu1 %1054  ;;  %v2642_v7 = vpop.permute.xlu0 %1144  ;;  %1106 = vrot.lane.b32.xlu2 %v764_v0, %s2297_s12  ;;  %v2753_v0 = vld [vmem:[#allocation2 + $0x41] sm:$0xff] }
 0x131   : > { %3531 = vst [vmem:[#allocation16_spill] sm:$0xff] %v2640_v6 }
 0x132   : > { %3532 = vst [vmem:[#allocation17_spill] sm:$0xff] %v2642_v7  ;;  %v2645_v8 = vpop.permute.xlu2 %968 }
 0x133   : > { %3533 = vst [vmem:[#allocation18_spill] sm:$0xff] %v2645_v8  ;;  %v2765_v8 = vld [vmem:[#allocation2 + $0xb1] sm:$0xff] }
 0x136   : > { %1134 = vrot.lane.b32.xlu1 %v2634_v5, %s2297_s12  ;;  %858 = vrot.lane.b32.xlu0 %v2647_v9, %s2296_s29 }
 0x138   : > { %v2655_v11 = vpop.permute.xlu1 %1146  ;;  %v2657_v12 = vpop.permute.xlu0 %848  ;;  %950 = vrot.lane.b32.xlu2 %v2653_v10, %s2295_s16 }
 0x139   : > { %3534 = vst [vmem:[#allocation19_spill] sm:$0xff] %v2655_v11 }
 0x13a   : > { %3535 = vst [vmem:[#allocation20_spill] sm:$0xff] %v2657_v12  ;;  %v2661_v13 = vpop.permute.xlu2 %1056 }
 0x13b   : > { %3536 = vst [vmem:[#allocation21_spill] sm:$0xff] %v2661_v13  ;;  %v2795_v13 = vld [vmem:[#allocation2 + $0x4a] sm:$0xff] }
 0x13e   : > { %978 = vrot.lane.b32.xlu1 %v2663_v14, %s2295_s16  ;;  %1108 = vrot.lane.b32.xlu0 %v2647_v9, %s2297_s12 }
 0x140   : > { %v2671_v17 = vpop.permute.xlu0 %940  ;;  %v2673_v18 = vpop.permute.xlu1 %850  ;;  %1038 = vrot.lane.b32.xlu2 %v2669_v15, %s2294_s30 }
 0x141   : > { %3537 = vst [vmem:[#allocation22_spill] sm:$0xff] %v2671_v17  ;;  %v2781_v17 = vld [vmem:[#allocation2 + $0xb9] sm:$0xff] }
 0x142   : > { %v2677_v19 = vpop.permute.xlu2 %944  ;;  %3547 = vst [vmem:[#allocation32_spill] sm:$0xff] %v2781_v17 }
 0x146   : > { %1066 = vrot.lane.b32.xlu1 %v2679_v21, %s2294_s30  ;;  %952 = vrot.lane.b32.xlu0 %v2681_v23, %s2295_s16 }
 0x148   : > { %v2689_v25 = vpop.permute.xlu0 %876  ;;  %v2691_v27 = vpop.permute.xlu1 %942  ;;  %886 = vrot.lane.b32.xlu2 %v2687_v24, %s2296_s29 }
 0x149   : > { %3538 = vst [vmem:[#allocation23_spill] sm:$0xff] %v2689_v25 }
 0x14a   : > { %v2695_v28 = vpop.permute.xlu2 %1032 }
 0x14b   : > { %3539 = vst [vmem:[#allocation24_spill] sm:$0xff] %v2695_v28 }
 0x14e   : > { %860 = vrot.lane.b32.xlu1 %v2697_v29, %s2296_s29  ;;  %1040 = vrot.lane.b32.xlu0 %v2699_v30, %s2294_s30 }
 0x150   : > { %v2705_v31 = vpop.permute.xlu0 %1126  ;;  %v2707_v32 = vpop.permute.xlu1 %1030  ;;  %1136 = vrot.lane.b32.xlu2 %v2687_v24, %s2297_s12 }
 0x151   : > { %3540 = vst [vmem:[#allocation25_spill] sm:$0xff] %v2705_v31 }
 0x152   : > { %3541 = vst [vmem:[#allocation26_spill] sm:$0xff] %v2707_v32  ;;  %v2711_v35 = vpop.permute.xlu2 %1174  ;;  %v2803_v32 = vld [vmem:[#allocation2 + $0x52] sm:$0xff] }
 0x153   : > { %3542 = vst [vmem:[#allocation27_spill] sm:$0xff] %v2711_v35 }
 0x154   : > { %3552 = vst [vmem:[#allocation37_spill] sm:$0xff] %v2803_v32 }
 0x156   : > { %1110 = vrot.lane.b32.xlu1 %v2697_v29, %s2297_s12  ;;  %888 = vrot.lane.b32.xlu0 %v2713_v36, %s2296_s29 }
 0x158   : > { %v2721_v38 = vpop.permute.xlu0 %970  ;;  %v2723_v39 = vpop.permute.xlu1 %878  ;;  %980 = vrot.lane.b32.xlu2 %v2719_v37, %s2295_s16 }
 0x15a   : > { %v2727_v40 = vpop.permute.xlu2 %880 }
 0x15e   : > { %1138 = vrot.lane.b32.xlu0 %v2713_v36, %s2297_s12  ;;  %954 = vrot.lane.b32.xlu1 %v2729_v41, %s2295_s16 }
 0x160   : > { %v2737_v44 = vpop.permute.xlu0 %1058  ;;  %v2739_v46 = vpop.permute.xlu1 %1128  ;;  %1068 = vrot.lane.b32.xlu2 %v2735_v43, %s2294_s30 }
 0x161   : > { %3543 = vst [vmem:[#allocation28_spill] sm:$0xff] %v2737_v44  ;;  %v2775_v44 = vld [vmem:[#allocation2 + $0x49] sm:$0xff] }
 0x162   : > { %3544 = vst [vmem:[#allocation29_spill] sm:$0xff] %v2739_v46  ;;  %v2743_v49 = vpop.permute.xlu2 %1130  ;;  %v2789_v46 = vld [vmem:[#allocation2 + $0x51] sm:$0xff] }
 0x163   : > { %3545 = vst [vmem:[#allocation30_spill] sm:$0xff] %v2743_v49 }
 0x164   : > { %3549 = vst [vmem:[#allocation34_spill] sm:$0xff] %v2789_v46 }
 0x166   : > { %982 = vrot.lane.b32.xlu0 %v2745_v51, %s2295_s16  ;;  %1042 = vrot.lane.b32.xlu1 %v2747_v54, %s2294_s30 }
 0x168   : > { %v2755_v11 = vpop.permute.xlu0 %1102  ;;  %v2757_v52 = vpop.permute.xlu1 %852  ;;  %862 = vrot.lane.b32.xlu2 %v2753_v0, %s2296_s29 }
 0x169   : > { %3546 = vst [vmem:[#allocation31_spill] sm:$0xff] %v2755_v11 }
 0x16a   : > { %v2761_v7 = vpop.permute.xlu2 %854 }
 0x16e   : > { %1070 = vrot.lane.b32.xlu0 %v2763_v58, %s2294_s30  ;;  %890 = vrot.lane.b32.xlu1 %v2765_v8, %s2296_s29 }
 0x170   : > { %v2771_v25 = vpop.permute.xlu1 %972  ;;  %v947_v49 = vpop.permute.xlu0 %946  ;;  %1112 = vrot.lane.b32.xlu2 %v2753_v0, %s2297_s12 }
 0x172   : > { %v975_v28 = vpop.permute.xlu2 %974 }
 0x176   : > { %1140 = vrot.lane.b32.xlu1 %v2765_v8, %s2297_s12  ;;  %864 = vrot.lane.b32.xlu0 %v2775_v44, %s2296_s29 }
 0x178   : > { %v2783_v12 = vpop.permute.xlu1 %1060  ;;  %v1035_v1 = vpop.permute.xlu0 %1034  ;;  %1142 = vrot.lane.b32.xlu2 %v2781_v17, %s2297_s12  ;;  %v2823_v17 = vld [vmem:[#allocation2 + $0x58] sm:$0xff] }
 0x179   : > { %3548 = vst [vmem:[#allocation33_spill] sm:$0xff] %v2783_v12 }
 0x17a   : > { %v2787_v56 = vpop.permute.xlu2 %1062 }
 0x17e   : > { %1114 = vrot.lane.b32.xlu0 %v2775_v44, %s2297_s12  ;;  %866 = vrot.lane.b32.xlu1 %v2789_v46, %s2296_s29 }
 0x180   : > { %v2797_v35 = vpop.permute.xlu1 %1104  ;;  %v2799_v11 = vpop.permute.xlu0 %1176  ;;  %956 = vrot.lane.b32.xlu2 %v2795_v13, %s2295_s16 }
 0x181   : > { %3550 = vst [vmem:[#allocation35_spill] sm:$0xff] %v2797_v35 }
 0x182   : > { %3551 = vst [vmem:[#allocation36_spill] sm:$0xff] %v2799_v11  ;;  %v857_v12 = vpop.permute.xlu2 %856 }
 0x183   : > { %v1464_v35 = vsel %vm623_vm2, %v2577_v48, %v857_v12  ;;  %v2831_v48 = vld [vmem:[#allocation2 + $0x59] sm:$0xff]  ;;  %v738_v12 = vld [vmem:[#allocation2 + $0x10] sm:$0xff] }
 0x186   : > { %958 = vrot.lane.b32.xlu0 %v2803_v32, %s2295_s16  ;;  %1116 = vrot.lane.b32.xlu1 %v2789_v46, %s2297_s12 }
 0x188   : > { %v883_v59 = vpop.permute.xlu0 %882  ;;  %v949_v11 = vpop.permute.xlu1 %948  ;;  %1044 = vrot.lane.b32.xlu2 %v2809_v50, %s2294_s30 }
 0x189   : > { %v1477_v2 = vsel %vm623_vm2, %v2575_v47, %v883_v59  ;;  %v2818_v31 = vsel %vm1482_vm3, %v1464_v35, %v949_v11  ;;  %v2839_v35 = vld [vmem:[#allocation2 + $0x60] sm:$0xff] }
 0x18a   : > { %v1107_v6 = vpop.permute.xlu2 %1106  ;;  %v2821_v3 = vsel %vm1482_vm3, %v1477_v2, %v975_v28  ;;  %v1461_v28 = vsel %vm623_vm2, %v738_v12, %v2673_v18  ;;  %3555 = vst [vmem:[#allocation40_spill] sm:$0xff] %v2839_v35 }
 0x18e   : > { %1046 = vrot.lane.b32.xlu0 %v2823_v17, %s2294_s30  ;;  %960 = vrot.lane.b32.xlu1 %v2825_v62, %s2295_s16  ;;  %v1485_v62 = vsel %vm1482_vm3, %v1461_v28, %v2691_v27  ;;  %v1463_v27 = vsel %vm623_vm2, %v2551_v34, %v2761_v7  ;;  %v2871_v34 = vld [vmem:[#allocation2 + $0x62] sm:$0xff] }
 0x190   : > { %v2833_v59 = vpop.permute.xlu0 %1132  ;;  %v1037_v11 = vpop.permute.xlu1 %1036  ;;  %868 = vrot.lane.b32.xlu2 %v2831_v48, %s2296_s29 }
 0x191   : > { %3554 = vst [vmem:[#allocation39_spill] sm:$0xff] %v2833_v59  ;;  %v1509_v59 = vsel %vm1506_vm4, %v1485_v62, %v1035_v1  ;;  %v2863_v1 = vld [vmem:[#allocation2 + $0x69] sm:$0xff] }
 0x192   : > { %v951_v2 = vpop.permute.xlu2 %950  ;;  %v1533_v18 = vsel %vm1530_vm5, %v1509_v59, %v1107_v6  ;;  %v2865_v6 = vld [vmem:[#allocation2 + $0x6a] sm:$0xff] }
 0x193   : > { %3557 = vst [vmem:[#allocation42_spill] sm:$0xff] %v2865_v6 }
 0x196   : > { %1048 = vrot.lane.b32.xlu1 %v2839_v35, %s2294_s30  ;;  %870 = vrot.lane.b32.xlu0 %v2841_v61, %s2296_s29  ;;  %v1487_v35 = vsel %vm1482_vm3, %v1463_v27, %v947_v49  ;;  %v2887_v27 = vld [vmem:[#allocation2 + $0x68] sm:$0xff] }
 0x198   : > { %v977_v12 = vpop.permute.xlu0 %976  ;;  %v1179_v32 = vpop.permute.xlu1 %1178  ;;  %1118 = vrot.lane.b32.xlu2 %v2831_v48, %s2297_s12 }
 0x199   : > { %v2857_v28 = vsel %vm1554_vm6, %v1533_v18, %v1179_v32 }
 0x19a   : > { %3556 = vst [vmem:[#allocation41_spill] sm:$0xff] %v2857_v28  ;;  %v1039_v46 = vpop.permute.xlu2 %1038 }
 0x19b   : > { %v2861_v62 = vsel %vm1506_vm4, %v1487_v35, %v1039_v46  ;;  %v1475_v35 = vsel %vm623_vm2, %v2536_v22, %v2723_v39 }
 0x19c   : > { %v1499_v18 = vsel %vm1482_vm3, %v1475_v35, %v2721_v38 }
 0x19e   : > { %872 = vrot.lane.b32.xlu1 %v2863_v1, %s2296_s29  ;;  %964 = vrot.lane.b32.xlu0 %v2865_v6, %s2295_s16  ;;  %v1462_v6 = vsel %vm623_vm2, %v2530_v20, %v2757_v52 }
 0x1a0   : > { %v1065_v7 = vpop.permute.xlu0 %1064  ;;  %v885_v32 = vpop.permute.xlu1 %884  ;;  %962 = vrot.lane.b32.xlu2 %v2871_v34, %s2295_s16 }
 0x1a1   : > { %v1478_v46 = vsel %vm623_vm2, %v2612_v60, %v885_v32  ;;  %v1476_v32 = vsel %vm623_vm2, %v2549_v33, %v2727_v40 }
 0x1a2   : > { %v887_v49 = vpop.permute.xlu2 %886  ;;  %v1502_v59 = vsel %vm1482_vm3, %v1478_v46, %v977_v12  ;;  %v1523_v12 = vsel %vm1506_vm4, %v1499_v18, %v2787_v56  ;;  %v1500_v46 = vsel %vm1482_vm3, %v1476_v32, %v2771_v25  ;;  %v693_v25 = vld [vmem:[%s2476_s9 + $0x8] sm:$0xff] }
 0x1a3   : > { %v1524_v40 = vsel %vm1506_vm4, %v1500_v46, %v1065_v7  ;;  %2035 = vmatmul.msk.f32.gmra.mxu2 %vm433_vm1, %v693_v25  ;;  %v1479_v7 = vsel %vm623_vm2, %v2632_v4, %v887_v49 }
 0x1a6   : > { %1122 = vrot.lane.b32.xlu1 %v2863_v1, %s2297_s12  ;;  %1120 = vrot.lane.b32.xlu0 %v2841_v61, %s2297_s12  ;;  %s2218_s12 = scalar_lea.hbm %s3507_s6, 512 }
 0x1a8   : > { %v1135_v22 = vpop.permute.xlu1 %1134  ;;  %v859_v39 = vpop.permute.xlu0 %858  ;;  %1050 = vrot.lane.b32.xlu2 %v2887_v27, %s2294_s30 }
 0x1a9   : > { %v2899_v38 = vsel %vm1530_vm5, %v1523_v12, %v1135_v22  ;;  %v1465_v35 = vsel %vm623_vm2, %v2604_v57, %v859_v39 }
 0x1aa   : > { %v1137_v28 = vpop.permute.xlu2 %1136  ;;  %v2905_v56 = vsel %vm1482_vm3, %v1465_v35, %v951_v2  ;;  %v1486_v2 = vsel %vm1482_vm3, %v1462_v6, %v2677_v19 }
 0x1ab   : > { %v2908_v18 = vsel %vm1530_vm5, %v1524_v40, %v1137_v28  ;;  %v1510_v28 = vsel %vm1506_vm4, %v1486_v2, %v1037_v11 }
 0x1ae   : > { %1340 = vrot.lane.b32.xlu1 %v2570_v45, %s2299_s14  ;;  %1268 = vrot.lane.b32.xlu0 %v2549_v33, %s2300_s17 }
 0x1b0   : > { %v979_v20 = vpop.permute.xlu1 %978  ;;  %v1109_v52 = vpop.permute.xlu0 %1108  ;;  %1412 = vrot.lane.b32.xlu2 %v2565_v42, %s2301_s18 }
 0x1b1   : > { %v1503_v45 = vsel %vm1482_vm3, %v1479_v7, %v979_v20  ;;  %v2928_v33 = vsel %vm1530_vm5, %v1510_v28, %v1109_v52 }
 0x1b2   : > { %v981_v32 = vpop.permute.xlu2 %980 }
 0x1b6   : > { %1270 = vrot.lane.b32.xlu1 %v2575_v47, %s2300_s17  ;;  %1198 = vrot.lane.b32.xlu0 %v2525_v16, %s2298_s13 }
 0x1b8   : > { %v1067_v19 = vpop.permute.xlu1 %1066  ;;  %v953_v11 = vpop.permute.xlu0 %952  ;;  %1342 = vrot.lane.b32.xlu2 %v2593_v53, %s2299_s14 }
 0x1b9   : > { %v1525_v6 = vsel %vm1506_vm4, %v2821_v3, %v1067_v19 }
 0x1ba   : > { %v1069_v49 = vpop.permute.xlu2 %1068 }
 0x1bb   : > { %v1526_v12 = vsel %vm1506_vm4, %v1502_v59, %v1069_v49 }
 0x1be   : > { %1246 = vrot.lane.b32.xlu1 %v2604_v57, %s2300_s17  ;;  %1414 = vrot.lane.b32.xlu0 %v2598_v55, %s2301_s18  ;;  %v694_v57 = vld [vmem:[%s2476_s9 + $0x10] sm:$0xff]  ;;  %s2077_s9 = sshll.u32 %s2280_s25, 5 }
 0x1bf   : > { %2036 = vmatmul.msk.f32.gmra.mxu2 %vm433_vm1, %v694_v57  ;;  %s1864_s30 = sadd.s32 %s2093_s20, %s2077_s9 }
 0x1c0   : > { %v861_v47 = vpop.permute.xlu1 %860  ;;  %v1041_v16 = vpop.permute.xlu0 %1040  ;;  %1200 = vrot.lane.b32.xlu2 %v2541_v26, %s2298_s13  ;;  %s2078_s16 = sshll.u32 %s1864_s30, 3 }
 0x1c1   : > { %v1466_v53 = vsel %vm623_vm2, %v2669_v15, %v861_v47  ;;  %v1512_v3 = vsel %vm1506_vm4, %v2818_v31, %v1041_v16 }
 0x1c2   : > { %v863_v22 = vpop.permute.xlu2 %862  ;;  %v1490_v59 = vsel %vm1482_vm3, %v1466_v53, %v953_v11 }
 0x1c6   : > { %1272 = vrot.lane.b32.xlu1 %v2612_v60, %s2300_s17  ;;  %1318 = vrot.lane.b32.xlu0 %v2647_v9, %s2299_s14 }
 0x1c8   : > { %v1111_v39 = vpop.permute.xlu1 %1110  ;;  %v889_v26 = vpop.permute.xlu0 %888  ;;  %1390 = vrot.lane.b32.xlu2 %v2653_v10, %s2301_s18 }
 0x1c9   : > { %v2960_v31 = vsel %vm1530_vm5, %v2861_v62, %v1111_v39  ;;  %v1480_v46 = vsel %vm623_vm2, %v2679_v21, %v889_v26  ;;  %v1467_v62 = vsel %vm623_vm2, %v2699_v30, %v863_v22  ;;  %v1657_v22 = vld [vmem:[%s3505_s4 + $0x38] sm:$0xff]  ;;  %v1655_v26 = vld [vmem:[%s3505_s4 + $0x28] sm:$0xff] }
 0x1ca   : > { %v2965_v60 = vsel %vm1482_vm3, %v1480_v46, %v981_v32  ;;  %v1113_v35 = vpop.permute.xlu2 %1112 }
 0x1cb   : > { %v2968_v9 = vsel %vm1530_vm5, %v1512_v3, %v1113_v35  ;;  %v1658_v3 = vld [vmem:[%s3505_s4 + $0x40] sm:$0xff] }
 0x1cc   : > { %2095 = vmatpush.msra.mxu3 %v1658_v3  ;;  %1740 = vmatpush.msrb.mxu1 %v1658_v3  ;;  %v1654_v35 = vld [vmem:[%s3505_s4 + $0x20] sm:$0xff] }
 0x1cd   : > { %v3563_v3 = vld [vmem:[#allocation40_spill] sm:$0xff] }
 0x1ce   : > { %1416 = vrot.lane.b32.xlu1 %v2620_v63, %s2301_s18  ;;  %1344 = vrot.lane.b32.xlu0 %v2634_v5, %s2299_s14 }
 0x1cf   : > { %2096 = vmatpush.msra.mxu3 %v1657_v22  ;;  %1741 = vmatpush.msrb.mxu1 %v1657_v22 }
 0x1d0   : > { %v1139_v40 = vpop.permute.xlu0 %1138  ;;  %v955_v25 = vpop.permute.xlu1 %954  ;;  %1248 = vrot.lane.b32.xlu2 %v2669_v15, %s2300_s17 }
 0x1d1   : > { %v2979_v2 = vsel %vm1530_vm5, %v1525_v6, %v1139_v40  ;;  %v2982_v28 = vsel %vm1482_vm3, %v1467_v62, %v955_v25  ;;  %v1652_v62 = vld [vmem:[%s3505_s4 + $0x10] sm:$0xff] }
 0x1d2   : > { %v1143_v7 = vpop.permute.xlu2 %1142 }
 0x1d6   : > { %1320 = vrot.lane.b32.xlu1 %v2697_v29, %s2299_s14  ;;  %1202 = vrot.lane.b32.xlu0 %v2565_v42, %s2298_s13 }
 0x1d8   : > { %v983_v5 = vpop.permute.xlu0 %982  ;;  %v1043_v20 = vpop.permute.xlu1 %1042  ;;  %1274 = vrot.lane.b32.xlu2 %v2632_v4, %s2300_s17 }
 0x1d9   : > { %v1513_v15 = vsel %vm1506_vm4, %v2905_v56, %v1043_v20 }
 0x1da   : > { %v957_v52 = vpop.permute.xlu2 %956 }
 0x1de   : > { %1346 = vrot.lane.b32.xlu1 %v2687_v24, %s2299_s14  ;;  %1392 = vrot.lane.b32.xlu0 %v2681_v23, %s2301_s18 }
 0x1e0   : > { %v1071_v32 = vpop.permute.xlu0 %1070  ;;  %v891_v29 = vpop.permute.xlu1 %890  ;;  %1418 = vrot.lane.b32.xlu2 %v2663_v14, %s2301_s18 }
 0x1e1   : > { %v1527_v42 = vsel %vm1506_vm4, %v1503_v45, %v1071_v32  ;;  %v1481_v4 = vsel %vm623_vm2, %v2735_v43, %v891_v29 }
 0x1e2   : > { %v3002_v19 = vsel %vm1482_vm3, %v1481_v4, %v983_v5  ;;  %v1045_v56 = vpop.permute.xlu2 %1044  ;;  %v3005_v11 = vsel %vm1530_vm5, %v1527_v42, %v1143_v7  ;;  %v1650_v5 = vld [vmem:[%s3505_s4] sm:$0xff] }
 0x1e3   : > { %v1514_v24 = vsel %vm1506_vm4, %v1490_v59, %v1045_v56  ;;  %v3558_v56 = vld [vmem:[#allocation34_spill] sm:$0xff] }
 0x1e6   : > { %1204 = vrot.lane.b32.xlu1 %v2598_v55, %s2298_s13  ;;  %1250 = vrot.lane.b32.xlu0 %v2699_v30, %s2300_s17 }
 0x1e8   : > { %v1141_v6 = vpop.permute.xlu1 %1140  ;;  %v865_v45 = vpop.permute.xlu0 %864  ;;  %1322 = vrot.lane.b32.xlu2 %v2753_v0, %s2299_s14 }
 0x1e9   : > { %v3015_v49 = vsel %vm1530_vm5, %v1526_v12, %v1141_v6  ;;  %v1468_v47 = vsel %vm623_vm2, %v2747_v54, %v865_v45  ;;  %v3559_v6 = vld [vmem:[#allocation37_spill] sm:$0xff] }
 0x1ea   : > { %v3019_v16 = vpop.permute.xlu2 %868  ;;  %v1492_v53 = vsel %vm1482_vm3, %v1468_v47, %v957_v52  ;;  %v3560_v47 = vld [vmem:[#allocation11_spill] sm:$0xff] }
 0x1eb   : > { %v1470_v4 = vsel %vm623_vm2, %v2823_v17, %v3019_v16 }
 0x1ee   : > { %1394 = vrot.lane.b32.xlu1 %v2729_v41, %s2301_s18  ;;  %1276 = vrot.lane.b32.xlu0 %v2679_v21, %s2300_s17  ;;  %v1656_v21 = vld [vmem:[%s3505_s4 + $0x30] sm:$0xff] }
 0x1ef   : > { %2097 = vmatpush.msra.mxu3 %v1656_v21  ;;  %1742 = vmatpush.msrb.mxu1 %v1656_v21 }
 0x1f0   : > { %v1115_v55 = vpop.permute.xlu0 %1114  ;;  %v867_v30 = vpop.permute.xlu1 %866  ;;  %1348 = vrot.lane.b32.xlu2 %v2713_v36, %s2299_s14 }
 0x1f1   : > { %v3029_v0 = vsel %vm1530_vm5, %v1513_v15, %v1115_v55  ;;  %v1469_v36 = vsel %vm623_vm2, %v2809_v50, %v867_v30  ;;  %2098 = vmatpush.msra.mxu3 %v1655_v26  ;;  %1743 = vmatpush.msrb.mxu1 %v1655_v26  ;;  %v3561_v55 = vld [vmem:[#allocation12_spill] sm:$0xff] }
 0x1f2   : > { %v1119_v12 = vpop.permute.xlu2 %1118 }
 0x1f3   : > { %2099 = vmatpush.msra.mxu3 %v1654_v35  ;;  %1744 = vmatpush.msrb.mxu1 %v1654_v35 }
 0x1f6   : > { %1180 = vrot.lane.b32.xlu1 %v2653_v10, %s2298_s13  ;;  %1420 = vrot.lane.b32.xlu0 %v2719_v37, %s2301_s18 }
 0x1f8   : > { %v959_v59 = vpop.permute.xlu0 %958  ;;  %v1117_v57 = vpop.permute.xlu1 %1116  ;;  %1252 = vrot.lane.b32.xlu2 %v2747_v54, %s2300_s17  ;;  %v1653_v54 = vld [vmem:[%s3505_s4 + $0x18] sm:$0xff] }
 0x1f9   : > { %v1493_v39 = vsel %vm1482_vm3, %v1469_v36, %v959_v59  ;;  %v3050_v10 = vsel %vm1530_vm5, %v1514_v24, %v1117_v57  ;;  %2100 = vmatpush.msra.mxu3 %v1653_v54  ;;  %1745 = vmatpush.msrb.mxu1 %v1653_v54  ;;  %v3564_v36 = vld [vmem:[#allocation15_spill] sm:$0xff] }
 0x1fa   : > { %v3055_v46 = vpop.permute.xlu2 %962 }
 0x1fb   : > { %2101 = vmatpush.msra.mxu3 %v1652_v62  ;;  %1746 = vmatpush.msrb.mxu1 %v1652_v62 }
 0x1fe   : > { %1324 = vrot.lane.b32.xlu1 %v2775_v44, %s2299_s14  ;;  %1206 = vrot.lane.b32.xlu0 %v2620_v63, %s2298_s13  ;;  %v1651_v44 = vld [vmem:[%s3505_s4 + $0x8] sm:$0xff] }
 0x1ff   : > { %2102 = vmatpush.msra.mxu3 %v1651_v44  ;;  %1747 = vmatpush.msrb.mxu1 %v1651_v44  ;;  %v3566_v44 = vld [vmem:[#allocation25_spill] sm:$0xff] }
 0x200   : > { %v1047_v40 = vpop.permute.xlu0 %1046  ;;  %v961_v25 = vpop.permute.xlu1 %960  ;;  %1278 = vrot.lane.b32.xlu2 %v2735_v43, %s2300_s17 }
 0x201   : > { %v1515_v7 = vsel %vm1506_vm4, %v2982_v28, %v1047_v40  ;;  %2103 = vmatpush.msra.mxu3 %v1650_v5  ;;  %1748 = vmatpush.msrb.mxu1 %v1650_v5 }
 0x202   : > { %v1051_v63 = vpop.permute.xlu2 %1050  ;;  %v3081_v20 = vsel %vm1530_vm5, %v1515_v7, %v1119_v12  ;;  %v3562_v12 = vld [vmem:[#allocation32_spill] sm:$0xff] }
 0x203   : > { %v1517_v15 = vsel %vm1506_vm4, %v1493_v39, %v1051_v63 }
 0x206   : > { %1350 = vrot.lane.b32.xlu1 %v2765_v8, %s2299_s14  ;;  %1396 = vrot.lane.b32.xlu0 %v2795_v13, %s2301_s18 }
 0x208   : > { %v1049_v43 = vpop.permute.xlu1 %1048  ;;  %v871_v28 = vpop.permute.xlu0 %870  ;;  %1422 = vrot.lane.b32.xlu2 %v2745_v51, %s2301_s18 }
 0x209   : > { %v1516_v52 = vsel %vm1506_vm4, %v1492_v53, %v1049_v43  ;;  %v3119_v53 = vld [vmem:[#allocation2 + $0xba] sm:$0xff]  ;;  %v1471_v22 = vsel %vm623_vm2, %v3563_v3, %v871_v28  ;;  %v3568_v28 = vld [vmem:[#allocation14_spill] sm:$0xff] }
 0x20a   : > { %v1413_v32 = vpop.permute.xlu2 %1412  ;;  %v1495_v54 = vsel %vm1482_vm3, %v1471_v22, %v3055_v46  ;;  %v2186_v43 = vld [vmem:[#allocation2 + $0xc0] sm:$0xff]  ;;  %v3572_v22 = vld [vmem:[#allocation31_spill] sm:$0xff] }
 0x20e   : > { %1254 = vrot.lane.b32.xlu1 %v2809_v50, %s2300_s17  ;;  %1182 = vrot.lane.b32.xlu0 %v2681_v23, %s2298_s13  ;;  %v1494_v50 = vsel %vm1482_vm3, %v1470_v4, %v961_v25  ;;  %v3569_v4 = vld [vmem:[#allocation6_spill] sm:$0xff] }
 0x20f   : > { %v1518_v16 = vsel %vm1506_vm4, %v1494_v50, %v3560_v47 }
 0x210   : > { %v873_v29 = vpop.permute.xlu1 %872  ;;  %v3095_v42 = vpop.permute.xlu0 %964  ;;  %1208 = vrot.lane.b32.xlu2 %v2663_v14, %s2298_s13  ;;  %v1542_v30 = vsel %vm1530_vm5, %v1518_v16, %v3561_v55  ;;  %v3571_v55 = vld [vmem:[#allocation26_spill] sm:$0xff] }
 0x211   : > { %v1566_v59 = vsel %vm1554_vm6, %v1542_v30, %v3564_v36  ;;  %v3173_v36 = vld [vmem:[#allocation2 + $0xc2] sm:$0xff] }
 0x212   : > { %v1343_v8 = vpop.permute.xlu2 %1342 }
 0x216   : > { %1280 = vrot.lane.b32.xlu1 %v2763_v58, %s2300_s17  ;;  %1326 = vrot.lane.b32.xlu0 %v3558_v56, %s2299_s14 }
 0x218   : > { %v1123_v23 = vpop.permute.xlu1 %1122  ;;  %v1121_v24 = vpop.permute.xlu0 %1120  ;;  %1398 = vrot.lane.b32.xlu2 %v3559_v6, %s2301_s18 }
 0x219   : > { %v3110_v14 = vsel %vm1530_vm5, %v1517_v15, %v1123_v23  ;;  %v3113_v45 = vsel %vm1530_vm5, %v1516_v52, %v1121_v24  ;;  %v736_v15 = vld [vmem:[#allocation2] sm:$0xff]  ;;  %v3570_v23 = vld [vmem:[#allocation7_spill] sm:$0xff] }
 0x21a   : > { %v3117_v58 = vpop.permute.xlu2 %1200  ;;  %v1459_v52 = vsel %vm623_vm2, %v736_v15, %v3568_v28 }
 0x21b   : > { %v1483_v24 = vsel %vm1482_vm3, %v1459_v52, %v3570_v23  ;;  %v737_v52 = vld [vmem:[#allocation2 + $0x8] sm:$0xff] }
 0x21c   : > { %v1507_v30 = vsel %vm1506_vm4, %v1483_v24, %v3571_v55 }
 0x21e   : > { %1424 = vrot.lane.b32.xlu1 %v3119_v53, %s2301_s18  ;;  %1352 = vrot.lane.b32.xlu0 %v3562_v12, %s2299_s14 }
 0x220   : > { %v1341_v21 = vpop.permute.xlu1 %1340  ;;  %v1269_v57 = vpop.permute.xlu0 %1268  ;;  %1184 = vrot.lane.b32.xlu2 %v2729_v41, %s2298_s13  ;;  %v3565_v41 = vld [vmem:[#allocation16_spill] sm:$0xff] }
 0x221   : > { %v1590_v39 = vsel %vm1578_vm7, %v1566_v59, %v1269_v57  ;;  %v1519_v40 = vsel %vm1506_vm4, %v1495_v54, %v3565_v41  ;;  %v3573_v59 = vld [vmem:[#allocation27_spill] sm:$0xff] }
 0x222   : > { %v1391_v26 = vpop.permute.xlu2 %1390  ;;  %v1614_v35 = vsel %vm1602_vm8, %v1590_v39, %v1341_v21  ;;  %v1543_v46 = vsel %vm1530_vm5, %v1519_v40, %v3566_v44  ;;  %v1531_v21 = vsel %vm1530_vm5, %v1507_v30, %v3572_v22  ;;  %v3574_v40 = vld [vmem:[#allocation21_spill] sm:$0xff]  ;;  %v3580_v30 = vld [vmem:[#allocation28_spill] sm:$0xff] }
 0x223   : > { %v1638_v62 = vsel %vm1626_vm9, %v1614_v35, %v1413_v32  ;;  %v1555_v57 = vsel %vm1554_vm6, %v1531_v21, %v3573_v59  ;;  %v3581_v22 = vld [vmem:[#allocation24_spill] sm:$0xff]  ;;  %v3582_v59 = vld [vmem:[#allocation35_spill] sm:$0xff] }
 0x224   : > { %2048 = vmatmul.msk.f32.vlgmr.msra.gmra.mxu3 %vm1663_vm10, %v1638_v62 }
 0x226   : > { %1210 = vrot.lane.b32.xlu1 %v2719_v37, %s2298_s13  ;;  %1256 = vrot.lane.b32.xlu0 %v2823_v17, %s2300_s17  ;;  %v3567_v17 = vld [vmem:[#allocation38_spill] sm:$0xff]  ;;  %v724_v16 = vpop.f32.mrf.mxu2 }
 0x227   : > { %v731_v12 = vmax.f32 %v724_v16, 0.0  ;;  %v3579_v16 = vld [vmem:[#allocation22_spill] sm:$0xff] }
 0x228   : > { %v1271_v25 = vpop.permute.xlu1 %1270  ;;  %v1199_v7 = vpop.permute.xlu0 %1198  ;;  %1328 = vrot.lane.b32.xlu2 %v2831_v48, %s2299_s14 }
 0x229   : > { %v1567_v63 = vsel %vm1554_vm6, %v1543_v46, %v1199_v7  ;;  %734 = vst.msk [vmem:[#allocation2 + $0xe0] sm:$0xff] %vm623_vm2, %v731_v12  ;;  %v3575_v7 = vld [vmem:[#allocation29_spill] sm:$0xff] }
 0x22a   : > { %v3150_v5 = vpop.permute.xlu2 %1248  ;;  %v1591_v37 = vsel %vm1578_vm7, %v1567_v63, %v1271_v25  ;;  %v2187_v63 = vld [vmem:[#allocation2 + $0xc8] sm:$0xff] }
 0x22b   : > { %v1615_v56 = vsel %vm1602_vm8, %v1591_v37, %v1343_v8  ;;  %v1472_v8 = vsel %vm623_vm2, %v2887_v27, %v873_v29 }
 0x22c   : > { %v1496_v39 = vsel %vm1482_vm3, %v1472_v8, %v3095_v42 }
 0x22d   : > { %v1520_v25 = vsel %vm1506_vm4, %v1496_v39, %v3574_v40 }
 0x22e   : > { %1400 = vrot.lane.b32.xlu1 %v3567_v17, %s2301_s18  ;;  %1282 = vrot.lane.b32.xlu0 %v2186_v43, %s2300_s17  ;;  %v1544_v42 = vsel %vm1530_vm5, %v1520_v25, %v3575_v7 }
 0x230   : > { %v1247_v48 = vpop.permute.xlu1 %1246  ;;  %v1415_v32 = vpop.permute.xlu0 %1414  ;;  %1354 = vrot.lane.b32.xlu2 %v3569_v4, %s2299_s14 }
 0x231   : > { %v1639_v50 = vsel %vm1626_vm9, %v1615_v56, %v1415_v32  ;;  %v1579_v35 = vsel %vm1578_vm7, %v1555_v57, %v1247_v48  ;;  %v3210_v48 = vld [vmem:[#allocation2 + $0xca] sm:$0xff]  ;;  %v3578_v56 = vld [vmem:[#allocation20_spill] sm:$0xff] }
 0x232   : > { %2049 = vmatmul.msk.f32.gmra.mxu3 %vm1663_vm10, %v1639_v50  ;;  %v3165_v47 = vpop.permute.xlu2 %1274  ;;  %v3577_v32 = vld [vmem:[#allocation13_spill] sm:$0xff]  ;;  %v1460_v50 = vsel %vm623_vm2, %v737_v52, %v3578_v56  ;;  %v3587_v52 = vld [vmem:[#allocation23_spill] sm:$0xff] }
 0x233   : > { %v1484_v55 = vsel %vm1482_vm3, %v1460_v50, %v3579_v16  ;;  %v3588_v50 = vld [vmem:[#allocation18_spill] sm:$0xff]  ;;  %v3589_v16 = vld [vmem:[#allocation33_spill] sm:$0xff] }
 0x234   : > { %v1508_v21 = vsel %vm1506_vm4, %v1484_v55, %v3581_v22 }
 0x235   : > { %v1532_v57 = vsel %vm1530_vm5, %v1508_v21, %v3582_v59 }
 0x236   : > { %1186 = vrot.lane.b32.xlu1 %v2795_v13, %s2298_s13  ;;  %1426 = vrot.lane.b32.xlu0 %v3173_v36, %s2301_s18 }
 0x238   : > { %v1273_v54 = vpop.permute.xlu1 %1272  ;;  %v1319_v29 = vpop.permute.xlu0 %1318  ;;  %1258 = vrot.lane.b32.xlu2 %v3563_v3, %s2300_s17  ;;  %v1568_v3 = vsel %vm1554_vm6, %v1544_v42, %v3117_v58  ;;  %v3576_v58 = vld [vmem:[#allocation9_spill] sm:$0xff] }
 0x239   : > { %v1603_v62 = vsel %vm1602_vm8, %v1579_v35, %v1319_v29  ;;  %v1592_v44 = vsel %vm1578_vm7, %v1568_v3, %v1273_v54  ;;  %v3583_v35 = vld [vmem:[#allocation30_spill] sm:$0xff] }
 0x23a   : > { %v1419_v41 = vpop.permute.xlu2 %1418  ;;  %v1627_v13 = vsel %vm1626_vm9, %v1603_v62, %v1391_v26 }
 0x23b   : > { %2037 = vmatmul.msk.f32.vlgmr.msrb.gmra.mxu1 %vm1663_vm10, %v1627_v13  ;;  %v3584_v13 = vld [vmem:[#allocation36_spill] sm:$0xff] }
 0x23c   : > { %v1556_v40 = vsel %vm1554_vm6, %v1532_v57, %v3584_v13  ;;  %v2191_v57 = vld [vmem:[#allocation2 + $0x71] sm:$0xff] }
 0x23d   : > { %v1580_v25 = vsel %vm1578_vm7, %v1556_v40, %v3150_v5  ;;  %v814_v5 = vld [vmem:[#allocation2 + $0xd0] sm:$0xff] }
 0x23e   : > { %1330 = vrot.lane.b32.xlu1 %v2841_v61, %s2299_s14  ;;  %1212 = vrot.lane.b32.xlu0 %v2745_v51, %s2298_s13  ;;  %v2188_v61 = vld [vmem:[#allocation2 + $0xc9] sm:$0xff] }
 0x23f   : > { %v2189_v51 = vld [vmem:[#allocation2 + $0x70] sm:$0xff] }
 0x240   : > { %v1417_v26 = vpop.permute.xlu1 %1416  ;;  %v1345_v46 = vpop.permute.xlu0 %1344  ;;  %1284 = vrot.lane.b32.xlu2 %v2187_v63, %s2300_s17  ;;  %v1473_v28 = vsel %vm623_vm2, %v2189_v51, %v3576_v58  ;;  %v817_v58 = vld [vmem:[#allocation2 + $0xd1] sm:$0xff] }
 0x241   : > { %v1616_v37 = vsel %vm1602_vm8, %v1592_v44, %v1345_v46  ;;  %v1497_v4 = vsel %vm1482_vm3, %v1473_v28, %v3577_v32  ;;  %v820_v28 = vld [vmem:[#allocation2 + $0xd2] sm:$0xff] }
 0x242   : > { %v1323_v15 = vpop.permute.xlu2 %1322  ;;  %v1640_v43 = vsel %vm1626_vm9, %v1616_v37, %v1417_v26  ;;  %v1521_v12 = vsel %vm1506_vm4, %v1497_v4, %v3580_v30  ;;  %v727_v39 = vpop.f32.mrf.mxu2 }
 0x243   : > { %2050 = vmatmul.msk.f32.gmra.mxu3 %vm1663_vm10, %v1640_v43  ;;  %v1545_v54 = vsel %vm1530_vm5, %v1521_v12, %v3583_v35  ;;  %v732_v29 = vmax.f32 %v727_v39, 0.0  ;;  %v3586_v43 = vld [vmem:[#allocation41_spill] sm:$0xff]  ;;  %v3590_v12 = vld [vmem:[#allocation39_spill] sm:$0xff] }
 0x245   : > { %735 = vst.msk [vmem:[#allocation2 + $0xe8] sm:$0xff] %vm623_vm2, %v732_v29  ;;  %v815_v29 = vld [vmem:[#allocation2 + $0xd8] sm:$0xff] }
 0x246   : > { %1356 = vrot.lane.b32.xlu1 %v2188_v61, %s2299_s14  ;;  %1402 = vrot.lane.b32.xlu0 %v2871_v34, %s2301_s18 }
 0x248   : > { %v1321_v23 = vpop.permute.xlu1 %1320  ;;  %v1203_v24 = vpop.permute.xlu0 %1202  ;;  %1428 = vrot.lane.b32.xlu2 %v3210_v48, %s2301_s18 }
 0x249   : > { %v1569_v62 = vsel %vm1554_vm6, %v1545_v54, %v1203_v24  ;;  %v1604_v7 = vsel %vm1602_vm8, %v1580_v25, %v1321_v23 }
 0x24a   : > { %v1349_v8 = vpop.permute.xlu2 %1348  ;;  %v1593_v3 = vsel %vm1578_vm7, %v1569_v62, %v3165_v47  ;;  %v2192_v62 = vld [vmem:[#allocation2 + $0x72] sm:$0xff] }
 0x24e   : > { %1188 = vrot.lane.b32.xlu0 %v3559_v6, %s2298_s13  ;;  %1260 = vrot.lane.b32.xlu1 %v2887_v27, %s2300_s17 }
 0x250   : > { %v1347_v42 = vpop.permute.xlu1 %1346  ;;  %v1393_v44 = vpop.permute.xlu0 %1392  ;;  %1214 = vrot.lane.b32.xlu2 %v3119_v53, %s2298_s13  ;;  %v3585_v53 = vld [vmem:[#allocation42_spill] sm:$0xff] }
 0x251   : > { %v1617_v6 = vsel %vm1602_vm8, %v1593_v3, %v1347_v42  ;;  %v1628_v26 = vsel %vm1626_vm9, %v1604_v7, %v1393_v44  ;;  %v821_v7 = vld [vmem:[#allocation2 + $0xda] sm:$0xff] }
 0x252   : > { %2038 = vmatmul.msk.f32.gmra.mxu1 %vm1663_vm10, %v1628_v26  ;;  %v1253_v27 = vpop.permute.xlu2 %1252  ;;  %v1641_v46 = vsel %vm1626_vm9, %v1617_v6, %v1419_v41  ;;  %v2190_v41 = vld [vmem:[#allocation2 + $0x78] sm:$0xff] }
 0x253   : > { %2051 = vmatmul.msk.f32.gmra.mxu3 %vm1663_vm10, %v1641_v46  ;;  %v1474_v32 = vsel %vm623_vm2, %v2190_v41, %v3587_v52 }
 0x254   : > { %v1498_v23 = vsel %vm1482_vm3, %v1474_v32, %v3588_v50 }
 0x255   : > { %v1522_v55 = vsel %vm1506_vm4, %v1498_v23, %v3589_v16  ;;  %v2196_v16 = vld [vmem:[#allocation2 + $0x81] sm:$0xff] }
 0x256   : > { %1332 = vrot.lane.b32.xlu0 %v2863_v1, %s2299_s14  ;;  %1286 = vrot.lane.b32.xlu1 %v814_v5, %s2300_s17  ;;  %v1546_v22 = vsel %vm1530_vm5, %v1522_v55, %v3590_v12  ;;  %v2197_v12 = vld [vmem:[#allocation2 + $0x82] sm:$0xff] }
 0x258   : > { %v1205_v47 = vpop.permute.xlu1 %1204  ;;  %v1251_v63 = vpop.permute.xlu0 %1250  ;;  %1404 = vrot.lane.b32.xlu2 %v3585_v53, %s2301_s18 }
 0x259   : > { %v1581_v61 = vsel %vm1578_vm7, %v3586_v43, %v1251_v63  ;;  %v1570_v21 = vsel %vm1554_vm6, %v1546_v22, %v1205_v47 }
 0x25a   : > { %v1279_v37 = vpop.permute.xlu2 %1278  ;;  %v1605_v56 = vsel %vm1602_vm8, %v1581_v61, %v1323_v15  ;;  %v819_v61 = vld [vmem:[#allocation2 + $0xe1] sm:$0xff] }
 0x25e   : > { %1358 = vrot.lane.b32.xlu0 %v817_v58, %s2299_s14  ;;  %1430 = vrot.lane.b32.xlu1 %v820_v28, %s2301_s18  ;;  %v2194_v58 = vld [vmem:[#allocation2 + $0x7a] sm:$0xff]  ;;  %v822_v28 = vld [vmem:[#allocation2 + $0xe2] sm:$0xff] }
 0x260   : > { %v1395_v1 = vpop.permute.xlu1 %1394  ;;  %v1277_v4 = vpop.permute.xlu0 %1276  ;;  %1190 = vrot.lane.b32.xlu2 %v3567_v17, %s2298_s13 }
 0x261   : > { %v1629_v24 = vsel %vm1626_vm9, %v1605_v56, %v1395_v1  ;;  %v1594_v17 = vsel %vm1578_vm7, %v1570_v21, %v1277_v4 }
 0x262   : > { %2039 = vmatmul.msk.f32.gmra.mxu1 %vm1663_vm10, %v1629_v24  ;;  %v1423_v30 = vpop.permute.xlu2 %1422  ;;  %v1618_v39 = vsel %vm1602_vm8, %v1594_v17, %v1349_v8 }
 0x266   : > { %1262 = vrot.lane.b32.xlu0 %v2189_v51, %s2300_s17  ;;  %1216 = vrot.lane.b32.xlu1 %v3173_v36, %s2298_s13  ;;  %v818_v51 = vld [vmem:[#allocation2 + $0xd9] sm:$0xff] }
 0x268   : > { %v1181_v15 = vpop.permute.xlu1 %1180  ;;  %v1421_v59 = vpop.permute.xlu0 %1420  ;;  %1334 = vrot.lane.b32.xlu2 %v2191_v57, %s2299_s14 }
 0x269   : > { %v1642_v35 = vsel %vm1626_vm9, %v1618_v39, %v1421_v59  ;;  %v1558_v8 = vsel %vm1554_vm6, %v2928_v33, %v1181_v15 }
 0x26a   : > { %v1209_v54 = vpop.permute.xlu2 %1208  ;;  %2052 = vmatmul.msk.f32.gmra.mxu3 %vm1663_vm10, %v1642_v35  ;;  %v1582_v42 = vsel %vm1578_vm7, %v1558_v8, %v1253_v27  ;;  %v816_v27 = vld [vmem:[#allocation2 + $0xe0] sm:$0xff] }
 0x26b   : > { %v1572_v56 = vsel %vm1554_vm6, %v2908_v18, %v1209_v54 }
 0x26e   : > { %1288 = vrot.lane.b32.xlu0 %v815_v29, %s2300_s17  ;;  %1406 = vrot.lane.b32.xlu1 %v2192_v62, %s2301_s18 }
 0x270   : > { %v1325_v36 = vpop.permute.xlu1 %1324  ;;  %v1207_v13 = vpop.permute.xlu0 %1206  ;;  %1360 = vrot.lane.b32.xlu2 %v818_v51, %s2299_s14 }
 0x271   : > { %v1571_v25 = vsel %vm1554_vm6, %v2899_v38, %v1207_v13  ;;  %v1606_v3 = vsel %vm1602_vm8, %v1582_v42, %v1325_v36 }
 0x272   : > { %v1399_v40 = vpop.permute.xlu2 %1398  ;;  %v1595_v6 = vsel %vm1578_vm7, %v1571_v25, %v1279_v37 }
 0x276   : > { %1432 = vrot.lane.b32.xlu0 %v821_v7, %s2301_s18  ;;  %1192 = vrot.lane.b32.xlu1 %v2871_v34, %s2298_s13  ;;  %v2193_v34 = vld [vmem:[#allocation2 + $0x79] sm:$0xff] }
 0x277   : > { %v3338_v7 = vld [vmem:[%s3506_s5] ss:$0 sm:$0xff] }
 0x278   : > { %v1351_v44 = vpop.permute.xlu1 %1350  ;;  %v1397_v26 = vpop.permute.xlu0 %1396  ;;  %1264 = vrot.lane.b32.xlu2 %v2190_v41, %s2300_s17 }
 0x279   : > { %v1619_v33 = vsel %vm1602_vm8, %v1595_v6, %v1351_v44  ;;  %v1630_v38 = vsel %vm1626_vm9, %v1606_v3, %v1397_v26 }
 0x27a   : > { %2040 = vmatmul.msk.f32.gmra.mxu1 %vm1663_vm10, %v1630_v38  ;;  %v1185_v46 = vpop.permute.xlu2 %1184  ;;  %v1643_v5 = vsel %vm1626_vm9, %v1619_v33, %v1423_v30 }
 0x27b   : > { %2053 = vmatmul.msk.f32.gmra.mxu3 %vm1663_vm10, %v1643_v5  ;;  %v1560_v18 = vsel %vm1554_vm6, %v2968_v9, %v1185_v46 }
 0x27e   : > { %1218 = vrot.lane.b32.xlu0 %v3210_v48, %s2298_s13  ;;  %1336 = vrot.lane.b32.xlu1 %v2193_v34, %s2299_s14 }
 0x280   : > { %v1255_v47 = vpop.permute.xlu1 %1254  ;;  %v1183_v63 = vpop.permute.xlu0 %1182  ;;  %1290 = vrot.lane.b32.xlu2 %v816_v27, %s2300_s17 }
 0x281   : > { %v1559_v43 = vsel %vm1554_vm6, %v2960_v31, %v1183_v63  ;;  %v2195_v31 = vld [vmem:[#allocation2 + $0x80] sm:$0xff] }
 0x282   : > { %v1329_v37 = vpop.permute.xlu2 %1328  ;;  %v1583_v41 = vsel %vm1578_vm7, %v1559_v43, %v1255_v47 }
 0x286   : > { %1408 = vrot.lane.b32.xlu0 %v2194_v58, %s2301_s18  ;;  %1362 = vrot.lane.b32.xlu1 %v819_v61, %s2299_s14 }
 0x288   : > { %v1281_v48 = vpop.permute.xlu1 %1280  ;;  %v1327_v52 = vpop.permute.xlu0 %1326  ;;  %1434 = vrot.lane.b32.xlu2 %v822_v28, %s2301_s18 }
 0x289   : > { %v1607_v32 = vsel %vm1602_vm8, %v1583_v41, %v1327_v52  ;;  %v1596_v50 = vsel %vm1578_vm7, %v1572_v56, %v1281_v48 }
 0x28a   : > { %v1631_v1 = vsel %vm1626_vm9, %v1607_v32, %v1399_v40  ;;  %v1355_v4 = vpop.permute.xlu2 %1354 }
 0x28b   : > { %2041 = vmatmul.msk.f32.gmra.mxu1 %vm1663_vm10, %v1631_v1 }
 0x28e   : > { %1194 = vrot.lane.b32.xlu0 %v3585_v53, %s2298_s13  ;;  %1266 = vrot.lane.b32.xlu1 %v2195_v31, %s2300_s17  ;;  %s356_s13 = sand.u32 1, %s2268_s22   ;;  %s1866_s17 = scalar_lea.hbm %s3507_s6, %s2078_s16 }
 0x28f   : > { %s1869_s24 = sshll.u32 %s1866_s17, 4  ;;  %s1852_s25 = scalar_lea.sflag [#allocation4], %s356_s13  ;;  %s1870_s24 = int_to_ptr.hbm [resolvable:$true] %s1869_s24 }
 0x290   : > { %v1425_v23 = vpop.permute.xlu1 %1424  ;;  %v1353_v24 = vpop.permute.xlu0 %1352  ;;  %1338 = vrot.lane.b32.xlu2 %v2196_v16, %s2299_s14  ;;  %s2212_s20 = sshra.s32 %s1870_s24, 4  ;;  %s2213_s20 = int_to_ptr.hbm [resolvable:$true] %s2212_s20 }
 0x291   : > { %v1620_v55 = vsel %vm1602_vm8, %v1596_v50, %v1353_v24  ;;  %s2214_s9 = scalar_lea.hbm %s2213_s20, 128  ;;  %p2219_p6 = scmp.lt.s32.totalorder %s2213_s20, %s3507_s6 }
 0x292   : > { %v1644_v30 = vsel %vm1626_vm9, %v1620_v55, %v1425_v23  ;;  %v1259_v53 = vpop.permute.xlu2 %1258  ;;  %p2215_p2 = scmp.ne.s32.totalorder %s2213_s20, %s2214_s9  ;;  %p2220_p7 = scmp.lt.s32.totalorder %s2218_s12, %s2214_s9 }
 0x293   : > { %2054 = vmatmul.msk.f32.gmra.mxu3 %vm1663_vm10, %v1644_v30 }
 0x294   : > { %p2216_p4 = pnand %p2215_p2, %p2389_p3  ;;  %p2221_p9 = por %p2220_p7, %p2219_p6 }
 0x296   : > { %1410 = vrot.lane.b32.xlu0 %v2197_v12, %s2301_s18  ;;  %s1997_s18 = sshll.u32 %s356_s13, 7  ;;  %p2217_p5 = pneg %p2216_p4 }
 0x297   : > { %s3352_s19 = scalar_lea.vmem [#allocation3], %s1997_s18 }
 0x298   : > { %v1211_v22 = vpop.permute.xlu1 %1210  ;;  %v1257_v21 = vpop.permute.xlu0 %1256  ;;  %s1867_s18 = sshll.u32 %s3352_s19, 4  ;;  %p2222_p10 = pnand %p2221_p9, %p2217_p5  ;;  %s1868_s18 = int_to_ptr.vmem [resolvable:$true] %s1867_s18 }
 0x299   : > { %v1584_v17 = vsel %vm1578_vm7, %v1560_v18, %v1257_v21  ;;  %v1573_v54 = vsel %vm1554_vm6, %v2979_v2, %v1211_v22 }
 0x29a   : > { %v1285_v15 = vpop.permute.xlu2 %1284  ;;  %v1608_v39 = vsel %vm1602_vm8, %v1584_v17, %v1329_v37 }
 0x2a0   : > { %v1401_v59 = vpop.permute.xlu1 %1400  ;;  %v1283_v57 = vpop.permute.xlu0 %1282 }
 0x2a1   : > { %v1632_v35 = vsel %vm1626_vm9, %v1608_v39, %v1401_v59  ;;  %v1597_v29 = vsel %vm1578_vm7, %v1573_v54, %v1283_v57 }
 0x2a2   : > { %2042 = vmatmul.msk.f32.gmra.mxu1 %vm1663_vm10, %v1632_v35  ;;  %v1621_v36 = vsel %vm1602_vm8, %v1597_v29, %v1355_v4  ;;  %v1429_v13 = vpop.permute.xlu2 %1428  ;;  %v3591_v35 = vld [vmem:[#allocation10_spill] sm:$0xff] }
 0x2a3   : > { %v1528_v54 = vsel %vm1506_vm4, %v2965_v60, %v3591_v35 }
 0x2a7   : > { %v1780_v62 = vpop.f32.mrf.mxu3 }
 0x2a8   : > { %v1187_v9 = vpop.permute.xlu1 %1186  ;;  %v1427_v51 = vpop.permute.xlu0 %1426 }
 0x2a9   : > { %v1645_v40 = vsel %vm1626_vm9, %v1621_v36, %v1427_v51  ;;  %v1561_v42 = vsel %vm1554_vm6, %v3029_v0, %v1187_v9  ;;  %v3592_v36 = vld [vmem:[#allocation17_spill] sm:$0xff] }
 0x2aa   : > { %2055 = vmatmul.msk.f32.gmra.mxu3 %vm1663_vm10, %v1645_v40  ;;  %v1215_v2 = vpop.permute.xlu2 %1214  ;;  %v1585_v26 = vsel %vm1578_vm7, %v1561_v42, %v1259_v53 }
 0x2b0   : > { %v1331_v8 = vpop.permute.xlu1 %1330  ;;  %v1213_v25 = vpop.permute.xlu0 %1212 }
 0x2b1   : > { %v1574_v3 = vsel %vm1554_vm6, %v3015_v49, %v1213_v25  ;;  %v1609_v33 = vsel %vm1602_vm8, %v1585_v26, %v1331_v8 }
 0x2b2   : > { %v1598_v5 = vsel %vm1578_vm7, %v1574_v3, %v1285_v15  ;;  %v1405_v43 = vpop.permute.xlu2 %1404 }
 0x2b5   : > { %v1782_v44 = vpop.f32.mrf.mxu3 }
 0x2b6   : > { %v1783_v6 = vadd.f32 %v3338_v7, %v1782_v44 }
 0x2b8   : > { %v1820_v38 = vmax.f32 %v1783_v6, 0.0  ;;  %v1357_v46 = vpop.permute.xlu1 %1356  ;;  %v1403_v34 = vpop.permute.xlu0 %1402 }
 0x2b9   : > { %v1622_v27 = vsel %vm1602_vm8, %v1598_v5, %v1357_v46  ;;  %v1750_v0 = vpop.f32.mrf.mxu1  ;;  %v1633_v47 = vsel %vm1626_vm9, %v1609_v33, %v1403_v34  ;;  %v3593_v46 = vld [vmem:[#allocation8_spill] sm:$0xff] }
 0x2ba   : > { %2066 = vst.msk [vmem:[%s3352_s19 + $0x40] sm:$0xff] %vm1530_vm5, %v1820_v38  ;;  %v1751_v49 = vadd.f32 %v3338_v7, %v1750_v0  ;;  %2043 = vmatmul.msk.f32.gmra.mxu1 %vm1663_vm10, %v1633_v47  ;;  %v1646_v63 = vsel %vm1626_vm9, %v1622_v27, %v1429_v13  ;;  %v1191_v41 = vpop.permute.xlu2 %1190  ;;  %v1552_v13 = vsel %vm1530_vm5, %v1528_v54, %v3592_v36  ;;  %v3594_v27 = vld [vmem:[#allocation19_spill] sm:$0xff] }
 0x2bb   : > { %2056 = vmatmul.msk.f32.gmra.mxu3 %vm1663_vm10, %v1646_v63  ;;  %v1563_v59 = vsel %vm1554_vm6, %v3081_v20, %v1191_v41  ;;  %v1529_v5 = vsel %vm1506_vm4, %v3002_v19, %v3593_v46 }
 0x2bc   : > { %v1812_v37 = vmax.f32 %v1751_v49, 0.0  ;;  %v1553_v0 = vsel %vm1530_vm5, %v1529_v5, %v3594_v27 }
 0x2be   : > { %1828 = vst.msk [vmem:[%s3352_s19] sm:$0xff] %vm1530_vm5, %v1812_v37 }
 0x2c0   : > { %v1189_v61 = vpop.permute.xlu0 %1188  ;;  %v1261_v58 = vpop.permute.xlu1 %1260 }
 0x2c1   : > { %v1562_v28 = vsel %vm1554_vm6, %v3050_v10, %v1189_v61  ;;  %v1575_v10 = vsel %vm1554_vm6, %v3005_v11, %v1215_v2 }
 0x2c2   : > { %v1586_v32 = vsel %vm1578_vm7, %v1562_v28, %v1261_v58  ;;  %v1335_v53 = vpop.permute.xlu2 %1334 }
 0x2c6   : > { %v1785_v48 = vpop.f32.mrf.mxu3 }
 0x2c7   : > { %v1786_v52 = vadd.f32 %v3338_v7, %v1785_v48 }
 0x2c8   : > { %v1333_v1 = vpop.permute.xlu0 %1332  ;;  %v1287_v4 = vpop.permute.xlu1 %1286 }
 0x2c9   : > { %v1821_v31 = vmax.f32 %v1786_v52, 0.0  ;;  %v1610_v56 = vsel %vm1602_vm8, %v1586_v32, %v1333_v1  ;;  %v1599_v24 = vsel %vm1578_vm7, %v1575_v10, %v1287_v4 }
 0x2ca   : > { %v1634_v50 = vsel %vm1626_vm9, %v1610_v56, %v1405_v43  ;;  %v1361_v15 = vpop.permute.xlu2 %1360 }
 0x2cb   : > { %2067 = vst.msk [vmem:[%s3352_s19 + $0x48] sm:$0xff] %vm1530_vm5, %v1821_v31  ;;  %2044 = vmatmul.msk.f32.gmra.mxu1 %vm1663_vm10, %v1634_v50 }
 0x2cf   : > { %v1753_v23 = vpop.f32.mrf.mxu1 }
 0x2d0   : > { %v1754_v16 = vadd.f32 %v3338_v7, %v1753_v23  ;;  %v1359_v55 = vpop.permute.xlu0 %1358  ;;  %v1431_v30 = vpop.permute.xlu1 %1430 }
 0x2d1   : > { %v1623_v12 = vsel %vm1602_vm8, %v1599_v24, %v1359_v55 }
 0x2d2   : > { %v1813_v22 = vmax.f32 %v1754_v16, 0.0  ;;  %v1647_v21 = vsel %vm1626_vm9, %v1623_v12, %v1431_v30  ;;  %v1265_v40 = vpop.permute.xlu2 %1264 }
 0x2d3   : > { %2057 = vmatmul.msk.f32.gmra.mxu3 %vm1663_vm10, %v1647_v21 }
 0x2d4   : > { %1829 = vst.msk [vmem:[%s3352_s19 + $0x8] sm:$0xff] %vm1530_vm5, %v1813_v22 }
 0x2d6   : > { %v1788_v18 = vpop.f32.mrf.mxu3 }
 0x2d8   : > { %v1263_v17 = vpop.permute.xlu0 %1262  ;;  %v1217_v11 = vpop.permute.xlu1 %1216 }
 0x2d9   : > { %v1587_v57 = vsel %vm1578_vm7, %v1563_v59, %v1263_v17  ;;  %v1576_v20 = vsel %vm1554_vm6, %v1552_v13, %v1217_v11 }
 0x2da   : > { %v1611_v9 = vsel %vm1602_vm8, %v1587_v57, %v1335_v53  ;;  %v1291_v6 = vpop.permute.xlu2 %1290 }
 0x2df   : > { %v1756_v39 = vpop.f32.mrf.mxu1 }
 0x2e0   : > { %v1289_v29 = vpop.permute.xlu0 %1288  ;;  %v1407_v62 = vpop.permute.xlu1 %1406 }
 0x2e1   : > { %v1635_v51 = vsel %vm1626_vm9, %v1611_v9, %v1407_v62  ;;  %v1600_v8 = vsel %vm1578_vm7, %v1576_v20, %v1289_v29 }
 0x2e2   : > { %2045 = vmatmul.msk.f32.gmra.mxu1 %vm1663_vm10, %v1635_v51  ;;  %v1624_v60 = vsel %vm1602_vm8, %v1600_v8, %v1361_v15  ;;  %v1435_v28 = vpop.permute.xlu2 %1434 }
 0x2e8   : > { %v1433_v25 = vpop.permute.xlu0 %1432  ;;  %v1193_v2 = vpop.permute.xlu1 %1192 }
 0x2e9   : > { %v1648_v42 = vsel %vm1626_vm9, %v1624_v60, %v1433_v25  ;;  %v1564_v34 = vsel %vm1554_vm6, %v3113_v45, %v1193_v2 }
 0x2ea   : > { %2058 = vmatmul.msk.f32.gmra.mxu3 %vm1663_vm10, %v1648_v42  ;;  %v1588_v49 = vsel %vm1578_vm7, %v1564_v34, %v1265_v40  ;;  %v1339_v23 = vpop.permute.xlu2 %1338 }
 0x2ed   : > { %v1790_v3 = vpop.f32.mrf.mxu3 }
 0x2ee   : > { %v1791_v44 = vadd.f32 %v3338_v7, %v1790_v3 }
 0x2f0   : > { %v1822_v26 = vmax.f32 %v1791_v44, 0.0  ;;  %v1219_v33 = vpop.permute.xlu0 %1218  ;;  %v1337_v38 = vpop.permute.xlu1 %1336 }
 0x2f1   : > { %v1577_v47 = vsel %vm1554_vm6, %v1553_v0, %v1219_v33  ;;  %v1612_v37 = vsel %vm1602_vm8, %v1588_v49, %v1337_v38 }
 0x2f2   : > { %2068 = vst.msk [vmem:[%s3352_s19 + $0x50] sm:$0xff] %vm1530_vm5, %v1822_v26  ;;  %v1601_v58 = vsel %vm1578_vm7, %v1577_v47, %v1291_v6 }
 0x2f7   : > { %v1758_v63 = vpop.f32.mrf.mxu1 }
 0x2f8   : > { %v1759_v43 = vadd.f32 %v3338_v7, %v1758_v63  ;;  %v1409_v61 = vpop.permute.xlu0 %1408  ;;  %v1363_v19 = vpop.permute.xlu1 %1362 }
 0x2f9   : > { %v1625_v45 = vsel %vm1602_vm8, %v1601_v58, %v1363_v19  ;;  %v1636_v48 = vsel %vm1626_vm9, %v1612_v37, %v1409_v61 }
 0x2fa   : > { %v1814_v41 = vmax.f32 %v1759_v43, 0.0  ;;  %2046 = vmatmul.msk.f32.gmra.mxu1 %vm1663_vm10, %v1636_v48  ;;  %v1649_v52 = vsel %vm1626_vm9, %v1625_v45, %v1435_v28 }
 0x2fb   : > { %2059 = vmatmul.msk.f32.gmra.mxu3 %vm1663_vm10, %v1649_v52 }
 0x2fc   : > { %2060 = vst.msk [vmem:[%s3352_s19 + $0x10] sm:$0xff] %vm1530_vm5, %v1814_v41 }
 0x2fe   : > { %v1793_v32 = vpop.f32.mrf.mxu3 }
 0x2ff   : > { %v1794_v1 = vadd.f32 %v3338_v7, %v1793_v32 }
 0x300   : > { %v1195_v4 = vpop.permute.xlu0 %1194  ;;  %v1267_v50 = vpop.permute.xlu1 %1266 }
 0x301   : > { %v1823_v31 = vmax.f32 %v1794_v1, 0.0  ;;  %v1565_v56 = vsel %vm1554_vm6, %v3110_v14, %v1195_v4 }
 0x302   : > { %v1589_v10 = vsel %vm1578_vm7, %v1565_v56, %v1267_v50 }
 0x303   : > { %2069 = vst.msk [vmem:[%s3352_s19 + $0x58] sm:$0xff] %vm1530_vm5, %v1823_v31  ;;  %v1613_v55 = vsel %vm1602_vm8, %v1589_v10, %v1339_v23 }
 0x308   : > { %v1411_v24 = vpop.permute.xlu0 %1410  ;;  %v1761_v16 = vpop.f32.mrf.mxu1 }
 0x309   : > { %v1762_v30 = vadd.f32 %v3338_v7, %v1761_v16  ;;  %v1637_v53 = vsel %vm1626_vm9, %v1613_v55, %v1411_v24 }
 0x30a   : > { %2047 = vmatmul.msk.f32.gmra.mxu1 %vm1663_vm10, %v1637_v53 }
 0x30b   : > { %v1815_v14 = vmax.f32 %v1762_v30, 0.0 }
 0x30d   : > { %2061 = vst.msk [vmem:[%s3352_s19 + $0x18] sm:$0xff] %vm1530_vm5, %v1815_v14 }
 0x316   : > { %v1796_v12 = vpop.f32.mrf.mxu3 }
 0x31f   : > { %v1764_v22 = vpop.f32.mrf.mxu1 }
 0x32d   : > { %v1798_v21 = vpop.f32.mrf.mxu3 }
 0x32e   : > { %v1799_v18 = vadd.f32 %v3338_v7, %v1798_v21 }
 0x330   : > { %v1824_v17 = vmax.f32 %v1799_v18, 0.0 }
 0x332   : > { %2070 = vst.msk [vmem:[%s3352_s19 + $0x60] sm:$0xff] %vm1530_vm5, %v1824_v17 }
 0x337   : > { %v1766_v11 = vpop.f32.mrf.mxu1 }
 0x338   : > { %v1767_v15 = vadd.f32 %v3338_v7, %v1766_v11 }
 0x33a   : > { %v1816_v59 = vmax.f32 %v1767_v15, 0.0 }
 0x33c   : > { %2062 = vst.msk [vmem:[%s3352_s19 + $0x20] sm:$0xff] %vm1530_vm5, %v1816_v59 }
 0x33e   : > { %v1801_v57 = vpop.f32.mrf.mxu3 }
 0x33f   : > { %v1802_v39 = vadd.f32 %v3338_v7, %v1801_v57 }
 0x341   : > { %v1825_v35 = vmax.f32 %v1802_v39, 0.0 }
 0x343   : > { %2071 = vst.msk [vmem:[%s3352_s19 + $0x68] sm:$0xff] %vm1530_vm5, %v1825_v35 }
 0x348   : > { %v1769_v54 = vpop.f32.mrf.mxu1 }
 0x349   : > { %v1770_v29 = vadd.f32 %v3338_v7, %v1769_v54 }
 0x34b   : > { %v1817_v62 = vmax.f32 %v1770_v29, 0.0 }
 0x34d   : > { %2063 = vst.msk [vmem:[%s3352_s19 + $0x28] sm:$0xff] %vm1530_vm5, %v1817_v62 }
 0x356   : > { %v1804_v9 = vpop.f32.mrf.mxu3 }
 0x35f   : > { %v1772_v51 = vpop.f32.mrf.mxu1 }
 0x36d   : > { %v1806_v36 = vpop.f32.mrf.mxu3 }
 0x36e   : > { %v1807_v13 = vadd.f32 %v3338_v7, %v1806_v36 }
 0x370   : > { %v1826_v20 = vmax.f32 %v1807_v13, 0.0 }
 0x372   : > { %2072 = vst.msk [vmem:[%s3352_s19 + $0x70] sm:$0xff] %vm1530_vm5, %v1826_v20 }
 0x377   : > { %v1774_v40 = vpop.f32.mrf.mxu1 }
 0x378   : > { %v1775_v8 = vadd.f32 %v3338_v7, %v1774_v40 }
 0x37a   : > { %v1818_v25 = vmax.f32 %v1775_v8, 0.0 }
 0x37c   : > { %2064 = vst.msk [vmem:[%s3352_s19 + $0x30] sm:$0xff] %vm1530_vm5, %v1818_v25 }
 0x37e   : > { %v1809_v2 = vpop.f32.mrf.mxu3 }
 0x37f   : > { %v1810_v60 = vadd.f32 %v3338_v7, %v1809_v2 }
 0x381   : > { %v1827_v42 = vmax.f32 %v1810_v60, 0.0 }
 0x383   : > { %2073 = vst.msk [vmem:[%s3352_s19 + $0x78] sm:$0xff] %vm1530_vm5, %v1827_v42 }
 0x387   : > { %v1777_v3 = vpop.f32.mrf.mxu1 }
 0x388   : > { %v1778_v44 = vadd.f32 %v3338_v7, %v1777_v3 }
 0x38a   : > { %v1819_v6 = vmax.f32 %v1778_v44, 0.0 }
 0x38c   : > { %2065 = vst.msk [vmem:[%s3352_s19 + $0x38] sm:$0xff] %vm1530_vm5, %v1819_v6 }
 0x38d   : > { %2225 = shalt.err (!%p2222_p10)
}
 0x38e   : > { %s2302_s13 = smov 128  }
 0x38f   : > { %2105 = dma.vmem_to_hbm [thread:$0]  (%p2389_p3), %s1868_s18, 2048, %s1870_s24, %s1852_s25, %s2302_s13, %s2302_s13, %s2296_s29  }
 0x390 PF: > { %p2111_p11 = scmp.ge.s32.totalorder %s2292_s28, 2  ;;  %s1884_s19 = sand.u32 1, %s2264_s21  }
 0x391   : > { %s1885_s30 = scalar_lea.sflag [#allocation4], %s1884_s19 }
 0x392   : > { %p2108_p12 = pnand %p2111_p11, %p2398_p8 }
 0x394   : > { %p2109_p13 = pneg %p2108_p12 }
 0x396   : > { %2259 = dma.done.wait (%p2109_p13), %s1885_s30, 2048  }
 0x397   : > { %2261 = vsyncadd (%p2109_p13), %s1885_s30, 4294965248  ;;  %s19_s28 = sadd.s32 1, %s2292_s28   ;;  %s3595_s21 = smov %s2268_s22 }
 0x398   : > { %p16_p0 = scmp.ge.s32.totalorder %s19_s28, 6   ;;  %s3596_s22 = smov %s2272_s23 }
 0x399   : > { %s3597_s23 = smov %s2407_s15  ;;  %s3598_s24 = smov %s2284_s26 }
 0x39a   : > { %s3599_s25 = smov %s2288_s27  ;;  %s3600_s26 = smov %s3603_s7 }
 0x39b   : > { %s3601_s27 = smov %s3607_s8  ;;  %18 = sbr.rel (!%p16_p0) target bundleno = 5 (0x5), region = 92 }
 0x3a0   :  { %1891 = vsyncpa [#allocation4], 1 }
 0x3a1   :  { %1893 = vsyncpa [#allocation4 + $0x1], 1 }

</bundles_post_ra>
